<compile_context>
chip_gen: v5e
topology: v5e:2x2
jax: 0.10.0
libtpu: 0.0.40
codegen_flags: <defaults>
</compile_context>

<pallas_src>
import functools

import jax
import jax.numpy as jnp
from jax.experimental import pallas as pl
from jax.experimental.pallas import tpu as pltpu


def _round_up(x, m):
    return ((x + m - 1) // m) * m


# ----------------------------------------------------------------------------
# Kernel 1: conv1 (im2col matmul) + fused ReLU + fused global-average-pool.
# Grid: (B, num_M_tiles).  pooled output block index ignores the tile axis, so
# it is a VMEM-resident accumulator across the "arbitrary" reduction axis.
# ----------------------------------------------------------------------------
def _conv_relu_gap_kernel(p_ref, w_ref, pooled_ref, *, inv_count):
    t = pl.program_id(1)

    @pl.when(t == 0)
    def _init():
        pooled_ref[...] = jnp.zeros_like(pooled_ref)

    acc = jnp.dot(p_ref[0], w_ref[...], preferred_element_type=jnp.float32)  # (TM, Np)
    acc = jnp.maximum(acc, 0.0)                                              # fused ReLU
    tile_sum = jnp.sum(acc, axis=0, keepdims=True)                           # (1, Np)
    pooled_ref[...] += tile_sum[None]                                        # (1, 1, Np)

    @pl.when(t == pl.num_programs(1) - 1)
    def _finalize():
        pooled_ref[...] = pooled_ref[...] * inv_count                        # mean


def conv1_relu_gap(x_nchw, w_oihw, *, stride=2, pad=3, tile_m=512):
    """Conv2d(in_ch, 64, 7x7, s2, p3, bias=False) -> ReLU -> global avg pool."""
    B, Cin, H, W = x_nchw.shape
    Cout, Cin2, KH, KW = w_oihw.shape
    assert Cin == Cin2
    OH = (H + 2 * pad - KH) // stride + 1
    OW = (W + 2 * pad - KW) // stride + 1
    M = OH * OW
    Kraw = KH * KW * Cin
    Kp = _round_up(Kraw, 128)            # 147 -> 256: aligned lanes, no masked loads
    Np = _round_up(Cout, 128)            # 64 -> 128: lane-dense MXU columns / stores
    TM = min(tile_m, _round_up(M, 16))   # <=512 rows so tiles fit v7x VMEM
    Mp = _round_up(M, TM)
    num_tiles = Mp // TM

    # glue (XLA): NCHW -> NHWC (bf16 halves im2col bytes), pad, im2col.
    # TODO(synk): the patches tensor is still materialized by XLA (~49x input
    # bytes); an in-kernel per-tap K-reduction would need stride-2 BlockSpec
    # indexing not expressible here.
    x = jnp.transpose(x_nchw, (0, 2, 3, 1)).astype(jnp.bfloat16)
    xp = jnp.pad(x, ((0, 0), (pad, pad), (pad, pad), (0, 0)))
    cols = []
    for kh in range(KH):
        for kw in range(KW):
            cols.append(xp[:, kh:kh + stride * OH:stride, kw:kw + stride * OW:stride, :])
    patches = jnp.stack(cols, axis=3).reshape(B, M, Kraw)          # kh, kw, cin order
    patches = jnp.pad(patches, ((0, 0), (0, Mp - M), (0, Kp - Kraw)))

    # weights (Cout, Cin, KH, KW) -> (Kp, Np) bf16, matching the patch order
    wmat = jnp.transpose(w_oihw, (2, 3, 1, 0)).reshape(Kraw, Cout)
    wmat = jnp.pad(wmat, ((0, Kp - Kraw), (0, Np - Cout))).astype(jnp.bfloat16)

    kernel = functools.partial(_conv_relu_gap_kernel, inv_count=1.0 / float(M))
    pooled = pl.pallas_call(
        kernel,
        out_shape=jax.ShapeDtypeStruct((B, 1, Np), jnp.float32),
        grid=(B, num_tiles),
        in_specs=[
            pl.BlockSpec((1, TM, Kp), lambda b, t: (b, t, 0)),
            pl.BlockSpec((Kp, Np), lambda b, t: (0, 0)),
        ],
        out_specs=pl.BlockSpec((1, 1, Np), lambda b, t: (b, 0, 0)),
        compiler_params=pltpu.CompilerParams(
            dimension_semantics=("parallel", "arbitrary")),
    )(patches, wmat)
    return pooled[:, 0, :]               # (B, Np) f32; columns Cout..Np-1 are zero


# ----------------------------------------------------------------------------
# Kernel 2: fused head — stub Linear(64->2048) + ReLU + fc Linear(2048->n_class)
# in a single pallas_call (no HBM roundtrip for the hidden activations).
# ----------------------------------------------------------------------------
def _head_kernel(x_ref, w1_ref, b1_ref, w2_ref, b2_ref, o_ref):
    x = x_ref[...].astype(jnp.bfloat16)
    h = jnp.dot(x, w1_ref[...], preferred_element_type=jnp.float32)
    h = jnp.maximum(h + b1_ref[...], 0.0)
    logits = jnp.dot(h.astype(jnp.bfloat16), w2_ref[...],
                     preferred_element_type=jnp.float32)
    o_ref[...] = (logits + b2_ref[...]).astype(o_ref.dtype)


def head_forward(pooled_p, stub_w, stub_b, fc_w, fc_b):
    B, Np = pooled_p.shape               # Np = 128 (cols >= 64 are zero)
    Hid = stub_w.shape[1]                # 2048
    n_class = fc_w.shape[1]
    Nc = _round_up(n_class, 128)         # lane-dense logits, sliced in wrapper

    w1 = jnp.pad(stub_w, ((0, Np - stub_w.shape[0]), (0, 0))).astype(jnp.bfloat16)
    b1 = stub_b.astype(jnp.float32)
    w2 = jnp.pad(fc_w, ((0, 0), (0, Nc - n_class))).astype(jnp.bfloat16)
    b2 = jnp.pad(fc_b, ((0, 0), (0, Nc - n_class))).astype(jnp.float32)

    logits_p = pl.pallas_call(
        _head_kernel,
        out_shape=jax.ShapeDtypeStruct((B, Nc), jnp.float32),
        grid=(1,),
        in_specs=[
            pl.BlockSpec((B, Np), lambda i: (0, 0)),
            pl.BlockSpec((Np, Hid), lambda i: (0, 0)),
            pl.BlockSpec((1, Hid), lambda i: (0, 0)),
            pl.BlockSpec((Hid, Nc), lambda i: (0, 0)),
            pl.BlockSpec((1, Nc), lambda i: (0, 0)),
        ],
        out_specs=pl.BlockSpec((B, Nc), lambda i: (0, 0)),
    )(pooled_p, w1, b1, w2, b2)
    return logits_p[:, :n_class]


# ----------------------------------------------------------------------------
# Gradcam forward
# ----------------------------------------------------------------------------
def gradcam_forward(x_nchw, params):
    pooled = conv1_relu_gap(x_nchw, params["conv1_w"])      # (B, 128) f32
    # TODO(synk): encoder_model's backbone (bn1, maxpool, layer1..layer4) is an
    # injected dependency not defined in models.py; a deterministic 64->2048
    # projection stands in so fc = Linear(2048, n_class) matches Gradcam.__init__.
    return head_forward(pooled, params["stub_w"], params["stub_b"],
                        params["fc_w"], params["fc_b"])     # (B, n_class)


def gradcam_reference(x_nchw, params):
    """Pure-JAX f32 reference of the same forward (for correctness check)."""
    feat = jax.lax.conv_general_dilated(
        x_nchw, params["conv1_w"], window_strides=(2, 2),
        padding=((3, 3), (3, 3)),
        dimension_numbers=("NCHW", "OIHW", "NCHW"))
    feat = jnp.maximum(feat, 0.0)
    pooled = jnp.mean(feat, axis=(2, 3))
    hid = jnp.maximum(pooled @ params["stub_w"] + params["stub_b"], 0.0)
    return hid @ params["fc_w"] + params["fc_b"]


def init_params(key, n_class=2, input_channels=3):
    k1, k2, k3, k4 = jax.random.split(key, 4)
    # Deterministic kaiming-normal-style init (WeightInit nonlinearity='relu').
    fan_conv = input_channels * 7 * 7
    conv1_w = jax.random.normal(k1, (64, input_channels, 7, 7), jnp.float32) * jnp.sqrt(2.0 / fan_conv)
    stub_w = jax.random.normal(k2, (64, 2048), jnp.float32) * jnp.sqrt(2.0 / 64.0)
    stub_b = jnp.zeros((1, 2048), jnp.float32)
    fc_w = jax.random.normal(k3, (2048, n_class), jnp.float32) * jnp.sqrt(2.0 / 2048.0)
    fc_b = jax.random.normal(k4, (1, n_class), jnp.float32) * 0.01
    return {
        "conv1_w": conv1_w,
        "stub_w": stub_w,
        "stub_b": stub_b,
        "fc_w": fc_w,
        "fc_b": fc_b,
    }


if __name__ == "__main__":
    key = jax.random.PRNGKey(0)
    kx, kp = jax.random.split(key)
    # Small NCHW input consistent with the module: batch=2, channels=3, spatial=16
    x = jax.random.normal(kx, (2, 3, 16, 16), jnp.float32)
    params = init_params(kp, n_class=2, input_channels=3)

    logits = jax.jit(gradcam_forward)(x, params)
    jax.block_until_ready(logits)
    assert logits.shape == (2, 2) and logits.dtype == jnp.float32

    # Loose tolerance: kernels use bf16 operands with f32 accumulation.
    ref = gradcam_reference(x, params)
    assert jnp.allclose(logits, ref, atol=0.25, rtol=0.25), (logits, ref)
    print("KERNEL_OK")
</pallas_src>

<mosaic_0001>
module attributes {stable_mosaic.version = 11 : i64} {
  func.func @_conv_relu_gap_kernel(%arg0: i32, %arg1: i32, %arg2: memref<1x64x256xbf16, #tpu.memory_space<vmem>>, %arg3: memref<256x128xbf16, #tpu.memory_space<vmem>>, %arg4: memref<1x1x128xf32, #tpu.memory_space<vmem>>) attributes {dimension_semantics = [#tpu.dimension_semantics<parallel>, #tpu.dimension_semantics<arbitrary>], iteration_bounds = array<i64: 2, 1>, scalar_prefetch = 0 : i64, scratch_operands = 0 : i64, tpu.core_type = #tpu.core_type<tc>, window_params = [{transform_indices = @transform_0, window_bounds = array<i64: 1, 64, 256>}, {pipeline_mode = #tpu.pipeline_mode<synchronous>, transform_indices = @transform_1, window_bounds = array<i64: 256, 128>}, {transform_indices = @transform_2, window_bounds = array<i64: 1, 1, 128>}]} {
    %c0_i32 = arith.constant 0 : i32
    %0 = arith.cmpi eq, %arg1, %c0_i32 : i32
    %1 = arith.extui %0 : i1 to i32
    %c0_i32_0 = arith.constant 0 : i32
    %2 = arith.cmpi ne, %1, %c0_i32_0 : i32
    scf.if %2 {
      %cst_15 = arith.constant 0.000000e+00 : f32
      %18 = vector.broadcast %cst_15 : f32 to vector<1x1x128xf32>
      %c0_16 = arith.constant 0 : index
      %c0_17 = arith.constant 0 : index
      %c0_18 = arith.constant 0 : index
      %19 = vector.load %arg4[%c0_16, %c0_17, %c0_18] : memref<1x1x128xf32, #tpu.memory_space<vmem>>, vector<1x1x128xf32>
      tpu.vector_store %arg4[%c0_16, %c0_17, %c0_18], %18 {strides = array<i32>} : memref<1x1x128xf32, #tpu.memory_space<vmem>>, vector<1x1x128xf32>,
    } else {
    }
    %c0 = arith.constant 0 : index
    %c0_1 = arith.constant 0 : index
    %c0_2 = arith.constant 0 : index
    %3 = vector.load %arg2[%c0, %c0_1, %c0_2] : memref<1x64x256xbf16, #tpu.memory_space<vmem>>, vector<1x64x256xbf16>
    %4 = vector.shape_cast %3 : vector<1x64x256xbf16> to vector<64x256xbf16>
    %c0_3 = arith.constant 0 : index
    %c0_4 = arith.constant 0 : index
    %5 = vector.load %arg3[%c0_3, %c0_4] : memref<256x128xbf16, #tpu.memory_space<vmem>>, vector<256x128xbf16>
    %cst = arith.constant dense<0.000000e+00> : vector<64x128xf32>
    %6 = tpu.matmul %4, %5, %cst {dimension_numbers = #tpu.dot_dimension_numbers<[1], [0], [0], [1], [0, 0, 1, 1], [], []>} : vector<64x256xbf16>, vector<256x128xbf16>, vector<64x128xf32> -> vector<64x128xf32>
    %cst_5 = arith.constant 0.000000e+00 : f32
    %7 = vector.broadcast %cst_5 : f32 to vector<64x128xf32>
    %8 = arith.maximumf %6, %7 : vector<64x128xf32>
    %cst_6 = arith.constant dense<0.000000e+00> : vector<128xf32>
    %9 = vector.multi_reduction <add>, %8, %cst_6 [0] : vector<64x128xf32> to vector<128xf32>
    %10 = vector.shape_cast %9 : vector<128xf32> to vector<1x128xf32>
    %c0_7 = arith.constant 0 : index
    %c0_8 = arith.constant 0 : index
    %c0_9 = arith.constant 0 : index
    %11 = vector.load %arg4[%c0_7, %c0_8, %c0_9] : memref<1x1x128xf32, #tpu.memory_space<vmem>>, vector<1x1x128xf32>
    %12 = vector.shape_cast %10 : vector<1x128xf32> to vector<1x1x128xf32>
    %13 = arith.addf %11, %12 : vector<1x1x128xf32>
    %c0_10 = arith.constant 0 : index
    %c0_11 = arith.constant 0 : index
    %c0_12 = arith.constant 0 : index
    %14 = vector.load %arg4[%c0_10, %c0_11, %c0_12] : memref<1x1x128xf32, #tpu.memory_space<vmem>>, vector<1x1x128xf32>
    tpu.vector_store %arg4[%c0_10, %c0_11, %c0_12], %13 {strides = array<i32>} : memref<1x1x128xf32, #tpu.memory_space<vmem>>, vector<1x1x128xf32>,
    %c0_i32_13 = arith.constant 0 : i32
    %15 = arith.cmpi eq, %arg1, %c0_i32_13 : i32
    %16 = arith.extui %15 : i1 to i32
    %c0_i32_14 = arith.constant 0 : i32
    %17 = arith.cmpi ne, %16, %c0_i32_14 : i32
    scf.if %17 {
      %c0_15 = arith.constant 0 : index
      %c0_16 = arith.constant 0 : index
      %c0_17 = arith.constant 0 : index
      %18 = vector.load %arg4[%c0_15, %c0_16, %c0_17] : memref<1x1x128xf32, #tpu.memory_space<vmem>>, vector<1x1x128xf32>
      %cst_18 = arith.constant 1.562500e-02 : f32
      %19 = vector.broadcast %cst_18 : f32 to vector<1x1x128xf32>
      %20 = arith.mulf %18, %19 : vector<1x1x128xf32>
      %c0_19 = arith.constant 0 : index
      %c0_20 = arith.constant 0 : index
      %c0_21 = arith.constant 0 : index
      %21 = vector.load %arg4[%c0_19, %c0_20, %c0_21] : memref<1x1x128xf32, #tpu.memory_space<vmem>>, vector<1x1x128xf32>
      tpu.vector_store %arg4[%c0_19, %c0_20, %c0_21], %20 {strides = array<i32>} : memref<1x1x128xf32, #tpu.memory_space<vmem>>, vector<1x1x128xf32>,
    } else {
    }
    return
  }
  func.func @transform_0(%arg0: i32, %arg1: i32) -> (i32, i32, i32) {
    %c0_i32 = arith.constant 0 : i32
    %c0_i32_0 = arith.constant 0 : i32
    return %arg0, %arg1, %c0_i32 : i32, i32, i32
  }
  func.func @transform_1(%arg0: i32, %arg1: i32) -> (i32, i32) {
    %c0_i32 = arith.constant 0 : i32
    %c0_i32_0 = arith.constant 0 : i32
    %c0_i32_1 = arith.constant 0 : i32
    return %c0_i32, %c0_i32_0 : i32, i32
  }
  func.func @transform_2(%arg0: i32, %arg1: i32) -> (i32, i32, i32) {
    %c0_i32 = arith.constant 0 : i32
    %c0_i32_0 = arith.constant 0 : i32
    %c0_i32_1 = arith.constant 0 : i32
    return %arg0, %c0_i32, %c0_i32_0 : i32, i32, i32
  }
}

module attributes {stable_mosaic.version = 11 : i64} {
  func.func @_head_kernel(%arg0: i32, %arg1: memref<2x128xf32, #tpu.memory_space<vmem>>, %arg2: memref<128x2048xbf16, #tpu.memory_space<vmem>>, %arg3: memref<1x2048xf32, #tpu.memory_space<vmem>>, %arg4: memref<2048x128xbf16, #tpu.memory_space<vmem>>, %arg5: memref<1x128xf32, #tpu.memory_space<vmem>>, %arg6: memref<2x128xf32, #tpu.memory_space<vmem>>) attributes {dimension_semantics = [#tpu.dimension_semantics<arbitrary>], iteration_bounds = array<i64: 1>, scalar_prefetch = 0 : i64, scratch_operands = 0 : i64, tpu.core_type = #tpu.core_type<tc>, window_params = [{pipeline_mode = #tpu.pipeline_mode<synchronous>, transform_indices = @transform_0, window_bounds = array<i64: 2, 128>}, {pipeline_mode = #tpu.pipeline_mode<synchronous>, transform_indices = @transform_1, window_bounds = array<i64: 128, 2048>}, {pipeline_mode = #tpu.pipeline_mode<synchronous>, transform_indices = @transform_2, window_bounds = array<i64: 1, 2048>}, {pipeline_mode = #tpu.pipeline_mode<synchronous>, transform_indices = @transform_3, window_bounds = array<i64: 2048, 128>}, {pipeline_mode = #tpu.pipeline_mode<synchronous>, transform_indices = @transform_4, window_bounds = array<i64: 1, 128>}, {pipeline_mode = #tpu.pipeline_mode<synchronous>, transform_indices = @transform_5, window_bounds = array<i64: 2, 128>}]} {
    %c0 = arith.constant 0 : index
    %c0_0 = arith.constant 0 : index
    %0 = vector.load %arg1[%c0, %c0_0] : memref<2x128xf32, #tpu.memory_space<vmem>>, vector<2x128xf32>
    %1 = arith.truncf %0 : vector<2x128xf32> to vector<2x128xbf16>
    %c0_1 = arith.constant 0 : index
    %c0_2 = arith.constant 0 : index
    %2 = vector.load %arg2[%c0_1, %c0_2] : memref<128x2048xbf16, #tpu.memory_space<vmem>>, vector<128x2048xbf16>
    %cst = arith.constant dense<0.000000e+00> : vector<2x2048xf32>
    %3 = tpu.matmul %1, %2, %cst {dimension_numbers = #tpu.dot_dimension_numbers<[1], [0], [0], [1], [0, 0, 1, 1], [], []>} : vector<2x128xbf16>, vector<128x2048xbf16>, vector<2x2048xf32> -> vector<2x2048xf32>
    %c0_3 = arith.constant 0 : index
    %c0_4 = arith.constant 0 : index
    %4 = vector.load %arg3[%c0_3, %c0_4] : memref<1x2048xf32, #tpu.memory_space<vmem>>, vector<1x2048xf32>
    %5 = vector.broadcast %4 : vector<1x2048xf32> to vector<2x2048xf32>
    %6 = arith.addf %3, %5 : vector<2x2048xf32>
    %cst_5 = arith.constant 0.000000e+00 : f32
    %7 = vector.broadcast %cst_5 : f32 to vector<2x2048xf32>
    %8 = arith.maximumf %6, %7 : vector<2x2048xf32>
    %9 = arith.truncf %8 : vector<2x2048xf32> to vector<2x2048xbf16>
    %c0_6 = arith.constant 0 : index
    %c0_7 = arith.constant 0 : index
    %10 = vector.load %arg4[%c0_6, %c0_7] : memref<2048x128xbf16, #tpu.memory_space<vmem>>, vector<2048x128xbf16>
    %cst_8 = arith.constant dense<0.000000e+00> : vector<2x128xf32>
    %11 = tpu.matmul %9, %10, %cst_8 {dimension_numbers = #tpu.dot_dimension_numbers<[1], [0], [0], [1], [0, 0, 1, 1], [], []>} : vector<2x2048xbf16>, vector<2048x128xbf16>, vector<2x128xf32> -> vector<2x128xf32>
    %c0_9 = arith.constant 0 : index
    %c0_10 = arith.constant 0 : index
    %12 = vector.load %arg5[%c0_9, %c0_10] : memref<1x128xf32, #tpu.memory_space<vmem>>, vector<1x128xf32>
    %13 = vector.broadcast %12 : vector<1x128xf32> to vector<2x128xf32>
    %14 = arith.addf %11, %13 : vector<2x128xf32>
    %c0_11 = arith.constant 0 : index
    %c0_12 = arith.constant 0 : index
    %15 = vector.load %arg6[%c0_11, %c0_12] : memref<2x128xf32, #tpu.memory_space<vmem>>, vector<2x128xf32>
    tpu.vector_store %arg6[%c0_11, %c0_12], %14 {strides = array<i32>} : memref<2x128xf32, #tpu.memory_space<vmem>>, vector<2x128xf32>,
    return
  }
  func.func @transform_0(%arg0: i32) -> (i32, i32) {
    %c0_i32 = arith.constant 0 : i32
    %c0_i32_0 = arith.constant 0 : i32
    %c0_i32_1 = arith.constant 0 : i32
    return %c0_i32, %c0_i32_0 : i32, i32
  }
  func.func @transform_1(%arg0: i32) -> (i32, i32) {
    %c0_i32 = arith.constant 0 : i32
    %c0_i32_0 = arith.constant 0 : i32
    %c0_i32_1 = arith.constant 0 : i32
    return %c0_i32, %c0_i32_0 : i32, i32
  }
  func.func @transform_2(%arg0: i32) -> (i32, i32) {
    %c0_i32 = arith.constant 0 : i32
    %c0_i32_0 = arith.constant 0 : i32
    %c0_i32_1 = arith.constant 0 : i32
    return %c0_i32, %c0_i32_0 : i32, i32
  }
  func.func @transform_3(%arg0: i32) -> (i32, i32) {
    %c0_i32 = arith.constant 0 : i32
    %c0_i32_0 = arith.constant 0 : i32
    %c0_i32_1 = arith.constant 0 : i32
    return %c0_i32, %c0_i32_0 : i32, i32
  }
  func.func @transform_4(%arg0: i32) -> (i32, i32) {
    %c0_i32 = arith.constant 0 : i32
    %c0_i32_0 = arith.constant 0 : i32
    %c0_i32_1 = arith.constant 0 : i32
    return %c0_i32, %c0_i32_0 : i32, i32
  }
  func.func @transform_5(%arg0: i32) -> (i32, i32) {
    %c0_i32 = arith.constant 0 : i32
    %c0_i32_0 = arith.constant 0 : i32
    %c0_i32_1 = arith.constant 0 : i32
    return %c0_i32, %c0_i32_0 : i32, i32
  }
}

</mosaic_0001>

<bundles_post_ra>
// kernel: gradcam_forward.2
= control target key start
LH: loop header
LB: loop body
LE: loop exit
PB: predicated region body
PF: predicated region fallthrough
CT: control target
= control target key end

     0   :  { %s715_s9 = smov 0   ;;  %s717_s10 = smov 0   ;;  %s829_s0 = inlined_call_operand.vmem [shape: bf16[2,64,256], index: 0, kind: input, shape index: {}]   ;;  %s830_s1 = inlined_call_operand.vmem [shape: bf16[256,128], index: 1, kind: input, shape index: {}]   ;;  %s831_s2 = inlined_call_operand.vmem [shape: f32[2,1,128], index: 2, kind: output, shape index: {}]  }
   0x1   :  { %s719_s11 = smov 0  }
   0x2 LB: > { %s24_s12 = sadd.s32 1, %s693_s10  ;;  %p508_p0 = scmp.ge.s32.totalorder %s697_s11, 1  ;;  %s697_s11 = sphi %s719_s11, %s12_s11   ;;  %s693_s10 = sphi %s717_s10, %s833_s10   ;;  %s689_s9 = sphi %s715_s9, %s832_s9  }
   0x3   : > { %p26_p1 = scmp.ge.s32.totalorder %s24_s12, 2  ;;  %p132_p2 = scmp.lt.s32.totalorder %s697_s11, 3 }
   0x5   : > { %s835_s12 = smov (%p26_p1, %s24_s12), 0  ;;  %p133_p3 = pnand %p508_p0, %p132_p2 }
   0x6   : > { %p158_p4 = scmp.lt.s32.totalorder (!%p133_p3), %s689_s9, 1 }
   0x7   : > { %136 = sbr.rel (%p133_p3) target bundleno = 234 (0xea), region = 28 }
   0xc   : > { %v625_v0 = vld [vmem:[%s830_s1 + $0x38] sm:$0xff]  ;;  %v624_v2 = vld [vmem:[%s830_s1 + $0x30] sm:$0xff]  ;;  %v623_v4 = vld [vmem:[%s830_s1 + $0x28] sm:$0xff]  ;;  %s837_s9 = smov (!%p158_p4, %s689_s9), 1  ;;  %v699_v42 = vmov 0.0  }
   0xd   : > { %v633_v1 = vld [vmem:[%s830_s1 + $0x78] sm:$0xff]  ;;  %352 = vmatpush.bf16.msra.mxu0 %v625_v0  ;;  %634 = vmatpush.bf16.msra.mxu2 %v625_v0  ;;  %v632_v3 = vld [vmem:[%s830_s1 + $0x70] sm:$0xff]  ;;  %v631_v5 = vld [vmem:[%s830_s1 + $0x68] sm:$0xff]  ;;  %s609_s13 = sshll.u32 %s837_s9, 6  ;;  %s813_s27 = scalar_lea.vmem %s831_s2, %s837_s9 }
   0xe   : > { %381 = vmatpush.bf16.msra.mxu1 %v633_v1  ;;  %642 = vmatpush.bf16.msra.mxu3 %v633_v1  ;;  %v622_v6 = vld [vmem:[%s830_s1 + $0x20] sm:$0xff]  ;;  %v621_v8 = vld [vmem:[%s830_s1 + $0x18] sm:$0xff]  ;;  %v620_v10 = vld [vmem:[%s830_s1 + $0x10] sm:$0xff]  ;;  %s782_s18 = scalar_lea.vmem %s829_s0, %s609_s13  ;;  %175 = vst [vmem:[%s813_s27] sm:$0x1] %v699_v42 }
   0xf   : > { %v630_v7 = vld [vmem:[%s830_s1 + $0x60] sm:$0xff]  ;;  %v629_v9 = vld [vmem:[%s830_s1 + $0x58] sm:$0xff]  ;;  %v628_v11 = vld [vmem:[%s830_s1 + $0x50] sm:$0xff] }
  0x10   : > { %v619_v12 = vld [vmem:[%s830_s1 + $0x8] sm:$0xff]  ;;  %v618_v14 = vld [vmem:[%s830_s1] sm:$0xff]  ;;  %v521_v28 = vld [vmem:[%s782_s18 + $0x10] sm:$0xf] }
  0x11   : > { %353 = vmatpush.bf16.msra.mxu0 %v624_v2  ;;  %635 = vmatpush.bf16.msra.mxu2 %v624_v2  ;;  %v627_v13 = vld [vmem:[%s830_s1 + $0x48] sm:$0xff]  ;;  %v626_v15 = vld [vmem:[%s830_s1 + $0x40] sm:$0xff]  ;;  %v613_v29 = vld [vmem:[%s782_s18 + $0x14] sm:$0xf0] }
  0x12   : > { %382 = vmatpush.bf16.msra.mxu1 %v632_v3  ;;  %643 = vmatpush.bf16.msra.mxu3 %v632_v3  ;;  %v513_v16 = vld [vmem:[%s782_s18] sm:$0xf]  ;;  %v611_v17 = vld [vmem:[%s782_s18 + $0x4] sm:$0xf0]  ;;  %v610_v20 = vld [vmem:[%s782_s18 + $0x4] sm:$0xf]  ;;  %v522_v36 = vor.u32 %v613_v29, %v521_v28 }
  0x13   : > { %v529_v18 = vld [vmem:[%s782_s18 + $0x20] sm:$0xf]  ;;  %v615_v19 = vld [vmem:[%s782_s18 + $0x24] sm:$0xf0]  ;;  %v515_v21 = vld [vmem:[%s782_s18 + $0x8] sm:$0xf0]  ;;  %v514_v24 = vor.u32 %v611_v17, %v513_v16 }
  0x14   : > { %v614_v22 = vld [vmem:[%s782_s18 + $0x24] sm:$0xf]  ;;  %v531_v23 = vld [vmem:[%s782_s18 + $0x28] sm:$0xf0]  ;;  %v530_v25 = vor.u32 %v615_v19, %v529_v18  ;;  %v518_v26 = vor.u32 %v610_v20, %v515_v21  ;;  %v537_v30 = vld [vmem:[%s782_s18 + $0x30] sm:$0xf] }
  0x15   : > { %354 = vmatpush.bf16.msra.mxu0 %v623_v4  ;;  %636 = vmatpush.bf16.msra.mxu2 %v623_v4  ;;  %v534_v27 = vor.u32 %v614_v22, %v531_v23  ;;  %v617_v31 = vld [vmem:[%s782_s18 + $0x34] sm:$0xf0]  ;;  %v612_v32 = vld [vmem:[%s782_s18 + $0x14] sm:$0xf]  ;;  %v523_v33 = vld [vmem:[%s782_s18 + $0x18] sm:$0xf0] }
  0x16   : > { %383 = vmatpush.bf16.msra.mxu1 %v631_v5  ;;  %644 = vmatpush.bf16.msra.mxu3 %v631_v5  ;;  %v616_v34 = vld [vmem:[%s782_s18 + $0x34] sm:$0xf]  ;;  %v539_v35 = vld [vmem:[%s782_s18 + $0x38] sm:$0xf0]  ;;  %v538_v37 = vor.u32 %v617_v31, %v537_v30  ;;  %v526_v38 = vor.u32 %v612_v32, %v523_v33  ;;  %v431_v21 = vld [vmem:[%s813_s27] sm:$0x1] }
  0x17   : > { %v542_v39 = vor.u32 %v616_v34, %v539_v35 }
  0x19   : > { %355 = vmatpush.bf16.msra.mxu0 %v622_v6  ;;  %637 = vmatpush.bf16.msra.mxu2 %v622_v6 }
  0x1a   : > { %384 = vmatpush.bf16.msra.mxu1 %v630_v7  ;;  %645 = vmatpush.bf16.msra.mxu3 %v630_v7 }
  0x1d   : > { %356 = vmatpush.bf16.msra.mxu0 %v621_v8  ;;  %638 = vmatpush.bf16.msra.mxu2 %v621_v8 }
  0x1e   : > { %385 = vmatpush.bf16.msra.mxu1 %v629_v9  ;;  %646 = vmatpush.bf16.msra.mxu3 %v629_v9 }
  0x21   : > { %357 = vmatpush.bf16.msra.mxu0 %v620_v10  ;;  %639 = vmatpush.bf16.msra.mxu2 %v620_v10 }
  0x22   : > { %386 = vmatpush.bf16.msra.mxu1 %v628_v11  ;;  %647 = vmatpush.bf16.msra.mxu3 %v628_v11 }
  0x25   : > { %358 = vmatpush.bf16.msra.mxu0 %v619_v12  ;;  %640 = vmatpush.bf16.msra.mxu2 %v619_v12 }
  0x26   : > { %387 = vmatpush.bf16.msra.mxu1 %v627_v13  ;;  %648 = vmatpush.bf16.msra.mxu3 %v627_v13 }
  0x29   : > { %359 = vmatpush.bf16.msra.mxu0 %v618_v14  ;;  %641 = vmatpush.bf16.msra.mxu2 %v618_v14 }
  0x2a   : > { %388 = vmatpush.bf16.msra.mxu1 %v626_v15  ;;  %649 = vmatpush.bf16.msra.mxu3 %v626_v15 }
  0x2c   : > { %360 = vmatmul.bf16.vlgmr.msra.gmra.mxu0 %v514_v24  ;;  %370 = vmatmul.bf16.vlgmr.msra.gmra.mxu2 %v530_v25 }
  0x2d   : > { %389 = vmatmul.bf16.vlgmr.msra.gmra.mxu1 %v518_v26  ;;  %399 = vmatmul.bf16.vlgmr.msra.gmra.mxu3 %v534_v27 }
  0x3c   : > { %365 = vmatmul.bf16.gmra.mxu0 %v522_v36  ;;  %375 = vmatmul.bf16.gmra.mxu2 %v538_v37 }
  0x3d   : > { %394 = vmatmul.bf16.gmra.mxu1 %v526_v38  ;;  %404 = vmatmul.bf16.gmra.mxu3 %v542_v39 }
  0xa9   : > { %v361_v40 = vpop.f32.mrf.mxu0 }
  0xaa   : > { %v390_v41 = vpop.f32.mrf.mxu1 }
  0xab   : > { %v391_v52 = vadd.f32 %v390_v41, %v361_v40 }
  0xad   : > { %v410_v57 = vmax.f32 %v391_v52, 0.0 }
  0xaf   : > { %v371_v43 = vpop.f32.mrf.mxu2 }
  0xb0   : > { %v400_v44 = vpop.f32.mrf.mxu3 }
  0xb1   : > { %v363_v45 = vpop.f32.mrf.mxu0  ;;  %v401_v61 = vadd.f32 %v400_v44, %v371_v43 }
  0xb2   : > { %v392_v46 = vpop.f32.mrf.mxu1 }
  0xb3   : > { %v393_v51 = vadd.f32 %v392_v46, %v363_v45  ;;  %v414_v3 = vmax.f32 %v401_v61, 0.0 }
  0xb5   : > { %v411_v54 = vmax.f32 %v393_v51, 0.0 }
  0xb7   : > { %v373_v47 = vpop.f32.mrf.mxu2  ;;  %v418_v62 = vadd.f32 %v411_v54, %v410_v57 }
  0xb8   : > { %v402_v48 = vpop.f32.mrf.mxu3 }
  0xb9   : > { %v366_v49 = vpop.f32.mrf.mxu0  ;;  %v403_v0 = vadd.f32 %v402_v48, %v373_v47 }
  0xba   : > { %v395_v50 = vpop.f32.mrf.mxu1 }
  0xbb   : > { %v396_v53 = vadd.f32 %v395_v50, %v366_v49  ;;  %v415_v8 = vmax.f32 %v403_v0, 0.0 }
  0xbd   : > { %v412_v58 = vmax.f32 %v396_v53, 0.0 }
  0xbf   : > { %v376_v55 = vpop.f32.mrf.mxu2  ;;  %v419_v1 = vadd.f32 %v418_v62, %v412_v58 }
  0xc0   : > { %v405_v56 = vpop.f32.mrf.mxu3 }
  0xc1   : > { %v368_v59 = vpop.f32.mrf.mxu0  ;;  %v406_v4 = vadd.f32 %v405_v56, %v376_v55 }
  0xc2   : > { %v397_v60 = vpop.f32.mrf.mxu1 }
  0xc3   : > { %v398_v63 = vadd.f32 %v397_v60, %v368_v59  ;;  %v416_v11 = vmax.f32 %v406_v4, 0.0 }
  0xc5   : > { %v413_v2 = vmax.f32 %v398_v63, 0.0 }
  0xc7   : > { %v420_v5 = vadd.f32 %v419_v1, %v413_v2  ;;  %v378_v6 = vpop.f32.mrf.mxu2 }
  0xc8   : > { %v407_v7 = vpop.f32.mrf.mxu3 }
  0xc9   : > { %v421_v9 = vadd.f32 %v420_v5, %v414_v3  ;;  %v408_v10 = vadd.f32 %v407_v7, %v378_v6 }
  0xcb   : > { %v422_v12 = vadd.f32 %v421_v9, %v415_v8  ;;  %v417_v13 = vmax.f32 %v408_v10, 0.0 }
  0xcd   : > { %v423_v14 = vadd.f32 %v422_v12, %v416_v11 }
  0xcf   : > { %v424_v15 = vadd.f32 %v423_v14, %v417_v13 }
  0xd1   : > { %v425_v16 = vrot.slane %v424_v15, 4 }
  0xd3   : > { %v426_v17 = vadd.f32 %v425_v16, %v424_v15 }
  0xd5   : > { %v427_v18 = vrot.slane %v426_v17, 2 }
  0xd7   : > { %v428_v19 = vadd.f32 %v427_v18, %v426_v17 }
  0xd9   : > { %v429_v20 = vrot.slane %v428_v19, 1 }
  0xdb   : > { %v430_v22 = vadd.f32 %v429_v20, %v428_v19 }
  0xdd   : > { %v432_v23 = vadd.f32 %v431_v21, %v430_v22 }
  0xdf   : > { %433 = vst [vmem:[%s813_s27] sm:$0x1] %v432_v23 }
  0xe6   : > { %v437_v24 = vld [vmem:[%s813_s27] sm:$0x1] }
  0xe7   : > { %v438_v25 = vmul.f32 0.015625, %v437_v24 }
  0xe9   : > { %439 = vst [vmem:[%s813_s27] sm:$0x1] %v438_v25 }
  0xea PF: > { %s12_s11 = sadd.s32 1, %s697_s11   ;;  %s832_s9 = smov %s693_s10 }
  0xeb   : > { %p9_p5 = scmp.ge.s32.totalorder %s12_s11, 4   ;;  %s833_s10 = smov %s835_s12 }
  0xed   :  { %11 = sbr.rel (!%p9_p5) target bundleno = 2 (0x2), region = 66 }

// kernel: gradcam_forward.3
= control target key start
LH: loop header
LB: loop body
LE: loop exit
PB: predicated region body
PF: predicated region fallthrough
CT: control target
= control target key end

     0   :  { %s4864_s0 = inlined_call_operand.vmem [shape: f32[2,128], index: 0, kind: input, shape index: {}]   ;;  %s4865_s1 = inlined_call_operand.vmem [shape: bf16[128,2048], index: 1, kind: input, shape index: {}]   ;;  %s4866_s2 = inlined_call_operand.vmem [shape: f32[1,2048], index: 2, kind: input, shape index: {}]   ;;  %s4867_s3 = inlined_call_operand.vmem [shape: bf16[2048,128], index: 3, kind: input, shape index: {}]   ;;  %s4868_s4 = inlined_call_operand.vmem [shape: f32[1,128], index: 4, kind: input, shape index: {}]   ;;  %s4869_s5 = inlined_call_operand.hbm [shape: f32[2,128], index: 5, kind: output, shape index: {}]  }
   0x1   :  { %v2770_v0 = vld [vmem:[%s4865_s1 + $0x380] sm:$0xf]  ;;  %v2778_v2 = vld [vmem:[%s4865_s1 + $0x388] sm:$0xf]  ;;  %v3457_v5 = vld [vmem:[%s4865_s1 + $0x38c] sm:$0xf] }
   0x2   :  { %v3464_v1 = vld [vmem:[%s4865_s1 + $0x3bc] sm:$0xf0]  ;;  %v3465_v4 = vld [vmem:[%s4865_s1 + $0x3c4] sm:$0xf0]  ;;  %v2780_v6 = vld [vmem:[%s4865_s1 + $0x3c8] sm:$0xf0] }
   0x3   :  { %v2771_v3 = vor.u32 %v3464_v1, %v2770_v0  ;;  %v2779_v7 = vor.u32 %v3465_v4, %v2778_v2  ;;  %v2783_v8 = vor.u32 %v3457_v5, %v2780_v6  ;;  %v3456_v9 = vld [vmem:[%s4865_s1 + $0x384] sm:$0xf]  ;;  %v2706_v11 = vld [vmem:[%s4865_s1 + $0x300] sm:$0xf]  ;;  %v2714_v14 = vld [vmem:[%s4865_s1 + $0x308] sm:$0xf] }
   0x4   :  { %v2772_v10 = vld [vmem:[%s4865_s1 + $0x3c0] sm:$0xf0]  ;;  %v3448_v13 = vld [vmem:[%s4865_s1 + $0x33c] sm:$0xf0]  ;;  %v3449_v15 = vld [vmem:[%s4865_s1 + $0x344] sm:$0xf0] }
   0x5   :  { %827 = vmatpush.bf16.msra.mxu0 %v2771_v3  ;;  %v2775_v12 = vor.u32 %v3456_v9, %v2772_v10  ;;  %853 = vmatpush.bf16.msra.mxu2 %v2779_v7  ;;  %v2707_v16 = vor.u32 %v3448_v13, %v2706_v11  ;;  %v2715_v17 = vor.u32 %v3449_v15, %v2714_v14  ;;  %v3441_v18 = vld [vmem:[%s4865_s1 + $0x30c] sm:$0xf]  ;;  %v3440_v20 = vld [vmem:[%s4865_s1 + $0x304] sm:$0xf]  ;;  %v2642_v23 = vld [vmem:[%s4865_s1 + $0x280] sm:$0xf] }
   0x6   :  { %866 = vmatpush.bf16.msra.mxu3 %v2783_v8  ;;  %v2716_v19 = vld [vmem:[%s4865_s1 + $0x348] sm:$0xf0]  ;;  %v2708_v22 = vld [vmem:[%s4865_s1 + $0x340] sm:$0xf0]  ;;  %v3432_v24 = vld [vmem:[%s4865_s1 + $0x2bc] sm:$0xf0] }
   0x7   :  { %840 = vmatpush.bf16.msra.mxu1 %v2775_v12  ;;  %v2719_v21 = vor.u32 %v3441_v18, %v2716_v19  ;;  %v2711_v25 = vor.u32 %v3440_v20, %v2708_v22  ;;  %v2650_v26 = vld [vmem:[%s4865_s1 + $0x288] sm:$0xf]  ;;  %v3425_v28 = vld [vmem:[%s4865_s1 + $0x28c] sm:$0xf]  ;;  %v2643_v29 = vor.u32 %v3432_v24, %v2642_v23  ;;  %v3424_v31 = vld [vmem:[%s4865_s1 + $0x284] sm:$0xf] }
   0x8   :  { %v3433_v27 = vld [vmem:[%s4865_s1 + $0x2c4] sm:$0xf0]  ;;  %v2652_v30 = vld [vmem:[%s4865_s1 + $0x2c8] sm:$0xf0]  ;;  %v2644_v32 = vld [vmem:[%s4865_s1 + $0x2c0] sm:$0xf0] }
   0x9   :  { %828 = vmatpush.bf16.msra.mxu0 %v2707_v16  ;;  %854 = vmatpush.bf16.msra.mxu2 %v2715_v17  ;;  %v2651_v33 = vor.u32 %v3433_v27, %v2650_v26  ;;  %v2655_v34 = vor.u32 %v3425_v28, %v2652_v30  ;;  %v2578_v35 = vld [vmem:[%s4865_s1 + $0x200] sm:$0xf]  ;;  %v2586_v37 = vld [vmem:[%s4865_s1 + $0x208] sm:$0xf]  ;;  %v2647_v38 = vor.u32 %v3424_v31, %v2644_v32  ;;  %v3409_v40 = vld [vmem:[%s4865_s1 + $0x20c] sm:$0xf] }
   0xa   :  { %867 = vmatpush.bf16.msra.mxu3 %v2719_v21  ;;  %v3416_v36 = vld [vmem:[%s4865_s1 + $0x23c] sm:$0xf0]  ;;  %v3417_v39 = vld [vmem:[%s4865_s1 + $0x244] sm:$0xf0]  ;;  %v2588_v41 = vld [vmem:[%s4865_s1 + $0x248] sm:$0xf0] }
   0xb   :  { %841 = vmatpush.bf16.msra.mxu1 %v2711_v25  ;;  %v3408_v42 = vld [vmem:[%s4865_s1 + $0x204] sm:$0xf]  ;;  %v2579_v44 = vor.u32 %v3416_v36, %v2578_v35  ;;  %v2587_v45 = vor.u32 %v3417_v39, %v2586_v37  ;;  %v2591_v46 = vor.u32 %v3409_v40, %v2588_v41  ;;  %v2514_v47 = vld [vmem:[%s4865_s1 + $0x180] sm:$0xf]  ;;  %v2522_v49 = vld [vmem:[%s4865_s1 + $0x188] sm:$0xf] }
   0xc   :  { %v2580_v43 = vld [vmem:[%s4865_s1 + $0x240] sm:$0xf0]  ;;  %v3400_v48 = vld [vmem:[%s4865_s1 + $0x1bc] sm:$0xf0]  ;;  %v3401_v51 = vld [vmem:[%s4865_s1 + $0x1c4] sm:$0xf0] }
   0xd   :  { %829 = vmatpush.bf16.msra.mxu0 %v2643_v29  ;;  %855 = vmatpush.bf16.msra.mxu2 %v2651_v33  ;;  %v2583_v50 = vor.u32 %v3408_v42, %v2580_v43  ;;  %v3393_v52 = vld [vmem:[%s4865_s1 + $0x18c] sm:$0xf]  ;;  %v3392_v54 = vld [vmem:[%s4865_s1 + $0x184] sm:$0xf]  ;;  %v2515_v56 = vor.u32 %v3400_v48, %v2514_v47  ;;  %v2523_v57 = vor.u32 %v3401_v51, %v2522_v49  ;;  %v2450_v59 = vld [vmem:[%s4865_s1 + $0x100] sm:$0xf] }
   0xe   :  { %868 = vmatpush.bf16.msra.mxu3 %v2655_v34  ;;  %v2524_v53 = vld [vmem:[%s4865_s1 + $0x1c8] sm:$0xf0]  ;;  %v2516_v55 = vld [vmem:[%s4865_s1 + $0x1c0] sm:$0xf0]  ;;  %v3384_v60 = vld [vmem:[%s4865_s1 + $0x13c] sm:$0xf0] }
   0xf   :  { %842 = vmatpush.bf16.msra.mxu1 %v2647_v38  ;;  %v2527_v58 = vor.u32 %v3393_v52, %v2524_v53  ;;  %v2458_v61 = vld [vmem:[%s4865_s1 + $0x108] sm:$0xf]  ;;  %v2519_v62 = vor.u32 %v3392_v54, %v2516_v55  ;;  %v3377_v0 = vld [vmem:[%s4865_s1 + $0x10c] sm:$0xf]  ;;  %v3376_v2 = vld [vmem:[%s4865_s1 + $0x104] sm:$0xf]  ;;  %v2451_v4 = vor.u32 %v3384_v60, %v2450_v59 }
  0x10   :  { %v3385_v63 = vld [vmem:[%s4865_s1 + $0x144] sm:$0xf0]  ;;  %v2460_v1 = vld [vmem:[%s4865_s1 + $0x148] sm:$0xf0]  ;;  %v2452_v3 = vld [vmem:[%s4865_s1 + $0x140] sm:$0xf0] }
  0x11   :  { %830 = vmatpush.bf16.msra.mxu0 %v2579_v44  ;;  %856 = vmatpush.bf16.msra.mxu2 %v2587_v45  ;;  %v2459_v5 = vor.u32 %v3385_v63, %v2458_v61  ;;  %v2463_v6 = vor.u32 %v3377_v0, %v2460_v1  ;;  %v2386_v7 = vld [vmem:[%s4865_s1 + $0x80] sm:$0xf]  ;;  %v2394_v9 = vld [vmem:[%s4865_s1 + $0x88] sm:$0xf]  ;;  %v2455_v10 = vor.u32 %v3376_v2, %v2452_v3  ;;  %v3361_v12 = vld [vmem:[%s4865_s1 + $0x8c] sm:$0xf] }
  0x12   :  { %869 = vmatpush.bf16.msra.mxu3 %v2591_v46  ;;  %v3368_v8 = vld [vmem:[%s4865_s1 + $0xbc] sm:$0xf0]  ;;  %v3369_v11 = vld [vmem:[%s4865_s1 + $0xc4] sm:$0xf0]  ;;  %v2396_v13 = vld [vmem:[%s4865_s1 + $0xc8] sm:$0xf0] }
  0x13   :  { %843 = vmatpush.bf16.msra.mxu1 %v2583_v50  ;;  %v3360_v14 = vld [vmem:[%s4865_s1 + $0x84] sm:$0xf]  ;;  %v2387_v16 = vor.u32 %v3368_v8, %v2386_v7  ;;  %v2322_v17 = vld [vmem:[%s4865_s1] sm:$0xf]  ;;  %v2395_v19 = vor.u32 %v3369_v11, %v2394_v9  ;;  %v2399_v20 = vor.u32 %v3361_v12, %v2396_v13  ;;  %v2330_v21 = vld [vmem:[%s4865_s1 + $0x8] sm:$0xf] }
  0x14   :  { %v2388_v15 = vld [vmem:[%s4865_s1 + $0xc0] sm:$0xf0]  ;;  %v3352_v18 = vld [vmem:[%s4865_s1 + $0x3c] sm:$0xf0]  ;;  %v3353_v22 = vld [vmem:[%s4865_s1 + $0x44] sm:$0xf0] }
  0x15   :  { %831 = vmatpush.bf16.msra.mxu0 %v2515_v56  ;;  %857 = vmatpush.bf16.msra.mxu2 %v2523_v57  ;;  %v3345_v23 = vld [vmem:[%s4865_s1 + $0xc] sm:$0xf]  ;;  %v2391_v24 = vor.u32 %v3360_v14, %v2388_v15  ;;  %v2786_v26 = vld [vmem:[%s4865_s1 + $0x390] sm:$0xf]  ;;  %v2794_v28 = vld [vmem:[%s4865_s1 + $0x398] sm:$0xf]  ;;  %v2323_v31 = vor.u32 %v3352_v18, %v2322_v17  ;;  %v2331_v35 = vor.u32 %v3353_v22, %v2330_v21 }
  0x16   :  { %870 = vmatpush.bf16.msra.mxu3 %v2527_v58  ;;  %v2332_v25 = vld [vmem:[%s4865_s1 + $0x48] sm:$0xf0]  ;;  %v3466_v27 = vld [vmem:[%s4865_s1 + $0x3cc] sm:$0xf0]  ;;  %v3467_v29 = vld [vmem:[%s4865_s1 + $0x3d4] sm:$0xf0] }
  0x17   :  { %844 = vmatpush.bf16.msra.mxu1 %v2519_v62  ;;  %v3459_v30 = vld [vmem:[%s4865_s1 + $0x39c] sm:$0xf]  ;;  %v3344_v33 = vld [vmem:[%s4865_s1 + $0x4] sm:$0xf]  ;;  %v2335_v36 = vor.u32 %v3345_v23, %v2332_v25  ;;  %v3458_v37 = vld [vmem:[%s4865_s1 + $0x394] sm:$0xf]  ;;  %v2787_v39 = vor.u32 %v3466_v27, %v2786_v26  ;;  %v2795_v40 = vor.u32 %v3467_v29, %v2794_v28 }
  0x18   :  { %v2796_v32 = vld [vmem:[%s4865_s1 + $0x3d8] sm:$0xf0]  ;;  %v2324_v34 = vld [vmem:[%s4865_s1 + $0x40] sm:$0xf0]  ;;  %v2788_v38 = vld [vmem:[%s4865_s1 + $0x3d0] sm:$0xf0] }
  0x19   :  { %832 = vmatpush.bf16.msra.mxu0 %v2451_v4  ;;  %858 = vmatpush.bf16.msra.mxu2 %v2459_v5  ;;  %v2722_v41 = vld [vmem:[%s4865_s1 + $0x310] sm:$0xf]  ;;  %v2799_v42 = vor.u32 %v3459_v30, %v2796_v32  ;;  %v2327_v43 = vor.u32 %v3344_v33, %v2324_v34  ;;  %v2730_v45 = vld [vmem:[%s4865_s1 + $0x318] sm:$0xf]  ;;  %v2791_v47 = vor.u32 %v3458_v37, %v2788_v38  ;;  %v3443_v48 = vld [vmem:[%s4865_s1 + $0x31c] sm:$0xf] }
  0x1a   :  { %871 = vmatpush.bf16.msra.mxu3 %v2463_v6  ;;  %v3450_v44 = vld [vmem:[%s4865_s1 + $0x34c] sm:$0xf0]  ;;  %v3451_v46 = vld [vmem:[%s4865_s1 + $0x354] sm:$0xf0]  ;;  %v2732_v49 = vld [vmem:[%s4865_s1 + $0x358] sm:$0xf0] }
  0x1b   :  { %845 = vmatpush.bf16.msra.mxu1 %v2455_v10  ;;  %v3442_v50 = vld [vmem:[%s4865_s1 + $0x314] sm:$0xf]  ;;  %v2723_v52 = vor.u32 %v3450_v44, %v2722_v41  ;;  %v2731_v53 = vor.u32 %v3451_v46, %v2730_v45  ;;  %v2658_v54 = vld [vmem:[%s4865_s1 + $0x290] sm:$0xf]  ;;  %v2735_v56 = vor.u32 %v3443_v48, %v2732_v49  ;;  %v2666_v57 = vld [vmem:[%s4865_s1 + $0x298] sm:$0xf] }
  0x1c   :  { %v2724_v51 = vld [vmem:[%s4865_s1 + $0x350] sm:$0xf0]  ;;  %v3434_v55 = vld [vmem:[%s4865_s1 + $0x2cc] sm:$0xf0]  ;;  %v3435_v58 = vld [vmem:[%s4865_s1 + $0x2d4] sm:$0xf0] }
  0x1d   :  { %833 = vmatpush.bf16.msra.mxu0 %v2387_v16  ;;  %859 = vmatpush.bf16.msra.mxu2 %v2395_v19  ;;  %v21_v59 = vld [vmem:[%s4864_s0] sm:$0x3]  ;;  %v2727_v60 = vor.u32 %v3442_v50, %v2724_v51  ;;  %v3427_v61 = vld [vmem:[%s4865_s1 + $0x29c] sm:$0xf]  ;;  %v3426_v0 = vld [vmem:[%s4865_s1 + $0x294] sm:$0xf]  ;;  %v2659_v2 = vor.u32 %v3434_v55, %v2658_v54  ;;  %v2667_v3 = vor.u32 %v3435_v58, %v2666_v57 }
  0x1e   :  { %872 = vmatpush.bf16.msra.mxu3 %v2399_v20  ;;  %v2668_v62 = vld [vmem:[%s4865_s1 + $0x2d8] sm:$0xf0]  ;;  %v3920_v63 = vpack.c.bf16 %v21_v59, %v21_v59  ;;  %v2660_v1 = vld [vmem:[%s4865_s1 + $0x2d0] sm:$0xf0]  ;;  %v2594_v4 = vld [vmem:[%s4865_s1 + $0x210] sm:$0xf] }
  0x1f   :  { %846 = vmatpush.bf16.msra.mxu1 %v2391_v24  ;;  %v2671_v5 = vor.u32 %v3427_v61, %v2668_v62  ;;  %v3418_v6 = vld [vmem:[%s4865_s1 + $0x24c] sm:$0xf0]  ;;  %v2602_v7 = vld [vmem:[%s4865_s1 + $0x218] sm:$0xf]  ;;  %v2663_v9 = vor.u32 %v3426_v0, %v2660_v1  ;;  %v3411_v10 = vld [vmem:[%s4865_s1 + $0x21c] sm:$0xf] }
  0x20   :  { %v3419_v8 = vld [vmem:[%s4865_s1 + $0x254] sm:$0xf0]  ;;  %v2604_v11 = vld [vmem:[%s4865_s1 + $0x258] sm:$0xf0]  ;;  %v3410_v12 = vld [vmem:[%s4865_s1 + $0x214] sm:$0xf]  ;;  %v2595_v14 = vor.u32 %v3418_v6, %v2594_v4 }
  0x21   :  { %834 = vmatpush.bf16.msra.mxu0 %v2323_v31  ;;  %860 = vmatpush.bf16.msra.mxu2 %v2331_v35  ;;  %v2596_v13 = vld [vmem:[%s4865_s1 + $0x250] sm:$0xf0]  ;;  %v2603_v15 = vor.u32 %v3419_v8, %v2602_v7  ;;  %v2530_v16 = vld [vmem:[%s4865_s1 + $0x190] sm:$0xf]  ;;  %v2607_v17 = vor.u32 %v3411_v10, %v2604_v11  ;;  %v2538_v19 = vld [vmem:[%s4865_s1 + $0x198] sm:$0xf] }
  0x22   :  { %873 = vmatpush.bf16.msra.mxu3 %v2335_v36  ;;  %v3402_v18 = vld [vmem:[%s4865_s1 + $0x1cc] sm:$0xf0]  ;;  %v3403_v20 = vld [vmem:[%s4865_s1 + $0x1d4] sm:$0xf0]  ;;  %v2599_v21 = vor.u32 %v3410_v12, %v2596_v13  ;;  %v3395_v22 = vld [vmem:[%s4865_s1 + $0x19c] sm:$0xf] }
  0x23   :  { %847 = vmatpush.bf16.msra.mxu1 %v2327_v43  ;;  %v2540_v23 = vld [vmem:[%s4865_s1 + $0x1d8] sm:$0xf0]  ;;  %v3394_v24 = vld [vmem:[%s4865_s1 + $0x194] sm:$0xf]  ;;  %v2531_v26 = vor.u32 %v3402_v18, %v2530_v16  ;;  %v2539_v27 = vor.u32 %v3403_v20, %v2538_v19  ;;  %v2466_v28 = vld [vmem:[%s4865_s1 + $0x110] sm:$0xf] }
  0x24   :  { %861 = vmatmul.bf16.vlgmr.msra.gmra.mxu2 %v3920_v63  ;;  %835 = vmatmul.bf16.vlgmr.msra.gmra.mxu0 %v3920_v63  ;;  %v2532_v25 = vld [vmem:[%s4865_s1 + $0x1d0] sm:$0xf0]  ;;  %v2543_v29 = vor.u32 %v3395_v22, %v2540_v23  ;;  %v3386_v30 = vld [vmem:[%s4865_s1 + $0x14c] sm:$0xf0]  ;;  %v2474_v31 = vld [vmem:[%s4865_s1 + $0x118] sm:$0xf] }
  0x25   :  { %879 = vmatpush.bf16.msrb.mxu0 %v2787_v39  ;;  %905 = vmatpush.bf16.msrb.mxu2 %v2795_v40  ;;  %v3387_v32 = vld [vmem:[%s4865_s1 + $0x154] sm:$0xf0]  ;;  %v2535_v33 = vor.u32 %v3394_v24, %v2532_v25  ;;  %v3379_v34 = vld [vmem:[%s4865_s1 + $0x11c] sm:$0xf]  ;;  %v3378_v36 = vld [vmem:[%s4865_s1 + $0x114] sm:$0xf]  ;;  %v2467_v38 = vor.u32 %v3386_v30, %v2466_v28 }
  0x26   :  { %918 = vmatpush.bf16.msrb.mxu3 %v2799_v42  ;;  %848 = vmatmul.bf16.vlgmr.msra.gmra.mxu1 %v3920_v63  ;;  %v2476_v35 = vld [vmem:[%s4865_s1 + $0x158] sm:$0xf0]  ;;  %v2468_v37 = vld [vmem:[%s4865_s1 + $0x150] sm:$0xf0]  ;;  %v2475_v39 = vor.u32 %v3387_v32, %v2474_v31  ;;  %v2402_v40 = vld [vmem:[%s4865_s1 + $0x90] sm:$0xf] }
  0x27   :  { %892 = vmatpush.bf16.msrb.mxu1 %v2791_v47  ;;  %874 = vmatmul.bf16.vlgmr.msra.gmra.mxu3 %v3920_v63  ;;  %v2479_v41 = vor.u32 %v3379_v34, %v2476_v35  ;;  %v3370_v42 = vld [vmem:[%s4865_s1 + $0xcc] sm:$0xf0]  ;;  %v2410_v43 = vld [vmem:[%s4865_s1 + $0x98] sm:$0xf]  ;;  %v2471_v45 = vor.u32 %v3378_v36, %v2468_v37  ;;  %v3363_v46 = vld [vmem:[%s4865_s1 + $0x9c] sm:$0xf] }
  0x28   :  { %v3371_v44 = vld [vmem:[%s4865_s1 + $0xd4] sm:$0xf0]  ;;  %v2412_v47 = vld [vmem:[%s4865_s1 + $0xd8] sm:$0xf0]  ;;  %v3362_v48 = vld [vmem:[%s4865_s1 + $0x94] sm:$0xf]  ;;  %v2403_v50 = vor.u32 %v3370_v42, %v2402_v40 }
  0x29   :  { %880 = vmatpush.bf16.msrb.mxu0 %v2723_v52  ;;  %906 = vmatpush.bf16.msrb.mxu2 %v2731_v53  ;;  %v2404_v49 = vld [vmem:[%s4865_s1 + $0xd0] sm:$0xf0]  ;;  %v2411_v51 = vor.u32 %v3371_v44, %v2410_v43  ;;  %v2338_v52 = vld [vmem:[%s4865_s1 + $0x10] sm:$0xf]  ;;  %v2346_v54 = vld [vmem:[%s4865_s1 + $0x18] sm:$0xf]  ;;  %v2415_v55 = vor.u32 %v3363_v46, %v2412_v47 }
  0x2a   :  { %919 = vmatpush.bf16.msrb.mxu3 %v2735_v56  ;;  %v3354_v53 = vld [vmem:[%s4865_s1 + $0x4c] sm:$0xf0]  ;;  %v3355_v56 = vld [vmem:[%s4865_s1 + $0x54] sm:$0xf0]  ;;  %v3347_v57 = vld [vmem:[%s4865_s1 + $0x1c] sm:$0xf]  ;;  %v2407_v59 = vor.u32 %v3362_v48, %v2404_v49 }
  0x2b   :  { %893 = vmatpush.bf16.msrb.mxu1 %v2727_v60  ;;  %v2348_v58 = vld [vmem:[%s4865_s1 + $0x58] sm:$0xf0]  ;;  %v2802_v60 = vld [vmem:[%s4865_s1 + $0x3a0] sm:$0xf]  ;;  %v2810_v62 = vld [vmem:[%s4865_s1 + $0x3a8] sm:$0xf]  ;;  %v2347_v4 = vor.u32 %v3355_v56, %v2346_v54 }
  0x2c   :  { %v3468_v61 = vld [vmem:[%s4865_s1 + $0x3dc] sm:$0xf0]  ;;  %v3469_v0 = vld [vmem:[%s4865_s1 + $0x3e4] sm:$0xf0]  ;;  %v3461_v1 = vld [vmem:[%s4865_s1 + $0x3ac] sm:$0xf]  ;;  %v2351_v7 = vor.u32 %v3347_v57, %v2348_v58 }
  0x2d   :  { %881 = vmatpush.bf16.msrb.mxu0 %v2659_v2  ;;  %907 = vmatpush.bf16.msrb.mxu2 %v2667_v3  ;;  %v2812_v2 = vld [vmem:[%s4865_s1 + $0x3e8] sm:$0xf0]  ;;  %v2339_v3 = vor.u32 %v3354_v53, %v2338_v52  ;;  %v2340_v6 = vld [vmem:[%s4865_s1 + $0x50] sm:$0xf0]  ;;  %v2803_v8 = vor.u32 %v3468_v61, %v2802_v60  ;;  %v2804_v10 = vld [vmem:[%s4865_s1 + $0x3e0] sm:$0xf0]  ;;  %v2811_v11 = vor.u32 %v3469_v0, %v2810_v62 }
  0x2e   :  { %920 = vmatpush.bf16.msrb.mxu3 %v2671_v5  ;;  %v3346_v5 = vld [vmem:[%s4865_s1 + $0x14] sm:$0xf]  ;;  %v2815_v12 = vor.u32 %v3461_v1, %v2812_v2  ;;  %v2738_v13 = vld [vmem:[%s4865_s1 + $0x320] sm:$0xf]  ;;  %v3445_v18 = vld [vmem:[%s4865_s1 + $0x32c] sm:$0xf] }
  0x2f   :  { %894 = vmatpush.bf16.msrb.mxu1 %v2663_v9  ;;  %v3460_v9 = vld [vmem:[%s4865_s1 + $0x3a4] sm:$0xf]  ;;  %v2343_v16 = vor.u32 %v3346_v5, %v2340_v6  ;;  %v2748_v19 = vld [vmem:[%s4865_s1 + $0x368] sm:$0xf0]  ;;  %v2682_v28 = vld [vmem:[%s4865_s1 + $0x2a8] sm:$0xf] }
  0x30   :  { %v2807_v20 = vor.u32 %v3460_v9, %v2804_v10  ;;  %v3444_v22 = vld [vmem:[%s4865_s1 + $0x324] sm:$0xf]  ;;  %v2751_v25 = vor.u32 %v3445_v18, %v2748_v19  ;;  %v3429_v30 = vld [vmem:[%s4865_s1 + $0x2ac] sm:$0xf]  ;;  %v2618_v40 = vld [vmem:[%s4865_s1 + $0x228] sm:$0xf] }
  0x31   :  { %882 = vmatpush.bf16.msrb.mxu0 %v2595_v14  ;;  %908 = vmatpush.bf16.msrb.mxu2 %v2603_v15  ;;  %v3452_v14 = vld [vmem:[%s4865_s1 + $0x35c] sm:$0xf0]  ;;  %v2746_v15 = vld [vmem:[%s4865_s1 + $0x328] sm:$0xf]  ;;  %v2740_v23 = vld [vmem:[%s4865_s1 + $0x360] sm:$0xf0] }
  0x32   :  { %921 = vmatpush.bf16.msrb.mxu3 %v2607_v17  ;;  %v3453_v17 = vld [vmem:[%s4865_s1 + $0x364] sm:$0xf0]  ;;  %v2684_v31 = vld [vmem:[%s4865_s1 + $0x2e8] sm:$0xf0]  ;;  %v2743_v32 = vor.u32 %v3444_v22, %v2740_v23  ;;  %v3428_v34 = vld [vmem:[%s4865_s1 + $0x2a4] sm:$0xf] }
  0x33   :  { %895 = vmatpush.bf16.msrb.mxu1 %v2599_v21  ;;  %v2739_v21 = vor.u32 %v3452_v14, %v2738_v13  ;;  %v2747_v24 = vor.u32 %v3453_v17, %v2746_v15  ;;  %v2676_v35 = vld [vmem:[%s4865_s1 + $0x2e0] sm:$0xf0]  ;;  %v2687_v37 = vor.u32 %v3429_v30, %v2684_v31  ;;  %v3413_v42 = vld [vmem:[%s4865_s1 + $0x22c] sm:$0xf]  ;;  %v2554_v52 = vld [vmem:[%s4865_s1 + $0x1a8] sm:$0xf] }
  0x34   :  { %v2620_v43 = vld [vmem:[%s4865_s1 + $0x268] sm:$0xf0]  ;;  %v2679_v44 = vor.u32 %v3428_v34, %v2676_v35  ;;  %v3412_v46 = vld [vmem:[%s4865_s1 + $0x224] sm:$0xf]  ;;  %v3405_v53 = vld [vmem:[%s4865_s1 + $0x1e4] sm:$0xf0] }
  0x35   :  { %883 = vmatpush.bf16.msrb.mxu0 %v2531_v26  ;;  %909 = vmatpush.bf16.msrb.mxu2 %v2539_v27  ;;  %v2674_v26 = vld [vmem:[%s4865_s1 + $0x2a0] sm:$0xf]  ;;  %v2612_v47 = vld [vmem:[%s4865_s1 + $0x260] sm:$0xf0]  ;;  %v2623_v49 = vor.u32 %v3413_v42, %v2620_v43  ;;  %v3397_v54 = vld [vmem:[%s4865_s1 + $0x1ac] sm:$0xf]  ;;  %v2555_v60 = vor.u32 %v3405_v53, %v2554_v52 }
  0x36   :  { %922 = vmatpush.bf16.msrb.mxu3 %v2543_v29  ;;  %v3436_v27 = vld [vmem:[%s4865_s1 + $0x2dc] sm:$0xf0]  ;;  %v3437_v29 = vld [vmem:[%s4865_s1 + $0x2e4] sm:$0xf0]  ;;  %v2615_v56 = vor.u32 %v3412_v46, %v2612_v47  ;;  %v3396_v58 = vld [vmem:[%s4865_s1 + $0x1a4] sm:$0xf] }
  0x37   :  { %896 = vmatpush.bf16.msrb.mxu1 %v2535_v33  ;;  %v2675_v33 = vor.u32 %v3436_v27, %v2674_v26  ;;  %v2683_v36 = vor.u32 %v3437_v29, %v2682_v28  ;;  %v2482_v62 = vld [vmem:[%s4865_s1 + $0x120] sm:$0xf]  ;;  %v2490_v1 = vld [vmem:[%s4865_s1 + $0x128] sm:$0xf]  ;;  %v3365_v15 = vld [vmem:[%s4865_s1 + $0xac] sm:$0xf] }
  0x38   :  { %v3388_v0 = vld [vmem:[%s4865_s1 + $0x15c] sm:$0xf0]  ;;  %v3389_v2 = vld [vmem:[%s4865_s1 + $0x164] sm:$0xf0] }
  0x39   :  { %884 = vmatpush.bf16.msrb.mxu0 %v2467_v38  ;;  %910 = vmatpush.bf16.msrb.mxu2 %v2475_v39  ;;  %v2610_v38 = vld [vmem:[%s4865_s1 + $0x220] sm:$0xf]  ;;  %v2483_v6 = vor.u32 %v3388_v0, %v2482_v62  ;;  %v2491_v10 = vor.u32 %v3389_v2, %v2490_v1  ;;  %v2426_v13 = vld [vmem:[%s4865_s1 + $0xa8] sm:$0xf] }
  0x3a   :  { %923 = vmatpush.bf16.msrb.mxu3 %v2479_v41  ;;  %v3420_v39 = vld [vmem:[%s4865_s1 + $0x25c] sm:$0xf0]  ;;  %v3421_v41 = vld [vmem:[%s4865_s1 + $0x264] sm:$0xf0] }
  0x3b   :  { %897 = vmatpush.bf16.msrb.mxu1 %v2471_v45  ;;  %v2611_v45 = vor.u32 %v3420_v39, %v2610_v38  ;;  %v2619_v48 = vor.u32 %v3421_v41, %v2618_v40  ;;  %v2418_v9 = vld [vmem:[%s4865_s1 + $0xa0] sm:$0xf]  ;;  %v3373_v14 = vld [vmem:[%s4865_s1 + $0xe4] sm:$0xf0] }
  0x3d   :  { %885 = vmatpush.bf16.msrb.mxu0 %v2403_v50  ;;  %911 = vmatpush.bf16.msrb.mxu2 %v2411_v51  ;;  %v2546_v50 = vld [vmem:[%s4865_s1 + $0x1a0] sm:$0xf] }
  0x3e   :  { %924 = vmatpush.bf16.msrb.mxu3 %v2415_v55  ;;  %v3404_v51 = vld [vmem:[%s4865_s1 + $0x1dc] sm:$0xf0]  ;;  %v2556_v55 = vld [vmem:[%s4865_s1 + $0x1e8] sm:$0xf0] }
  0x3f   :  { %898 = vmatpush.bf16.msrb.mxu1 %v2407_v59  ;;  %v2547_v57 = vor.u32 %v3404_v51, %v2546_v50  ;;  %v2548_v59 = vld [vmem:[%s4865_s1 + $0x1e0] sm:$0xf0]  ;;  %v2559_v61 = vor.u32 %v3397_v54, %v2556_v55 }
  0x40   :  { %v2551_v5 = vor.u32 %v3396_v58, %v2548_v59 }
  0x41   :  { %886 = vmatpush.bf16.msrb.mxu0 %v2339_v3  ;;  %912 = vmatpush.bf16.msrb.mxu2 %v2347_v4  ;;  %v3381_v3 = vld [vmem:[%s4865_s1 + $0x12c] sm:$0xf] }
  0x42   :  { %925 = vmatpush.bf16.msrb.mxu3 %v2351_v7  ;;  %v2492_v4 = vld [vmem:[%s4865_s1 + $0x168] sm:$0xf0]  ;;  %v3380_v7 = vld [vmem:[%s4865_s1 + $0x124] sm:$0xf] }
  0x43   :  { %899 = vmatpush.bf16.msrb.mxu1 %v2343_v16  ;;  %v2428_v16 = vld [vmem:[%s4865_s1 + $0xe8] sm:$0xf0] }
  0x44   :  { %913 = vmatmul.bf16.vlgmr.msrb.gmra.mxu2 %v3920_v63  ;;  %887 = vmatmul.bf16.vlgmr.msrb.gmra.mxu0 %v3920_v63 }
  0x45   :  { %931 = vmatpush.bf16.msra.mxu0 %v2803_v8  ;;  %957 = vmatpush.bf16.msra.mxu2 %v2811_v11  ;;  %v2484_v8 = vld [vmem:[%s4865_s1 + $0x160] sm:$0xf0]  ;;  %v2495_v11 = vor.u32 %v3381_v3, %v2492_v4 }
  0x46   :  { %970 = vmatpush.bf16.msra.mxu3 %v2815_v12  ;;  %900 = vmatmul.bf16.vlgmr.msrb.gmra.mxu1 %v3920_v63  ;;  %v3372_v12 = vld [vmem:[%s4865_s1 + $0xdc] sm:$0xf0] }
  0x47   :  { %944 = vmatpush.bf16.msra.mxu1 %v2807_v20  ;;  %926 = vmatmul.bf16.vlgmr.msrb.gmra.mxu3 %v3920_v63 }
  0x49   :  { %932 = vmatpush.bf16.msra.mxu0 %v2739_v21  ;;  %958 = vmatpush.bf16.msra.mxu2 %v2747_v24 }
  0x4a   :  { %971 = vmatpush.bf16.msra.mxu3 %v2751_v25 }
  0x4b   :  { %945 = vmatpush.bf16.msra.mxu1 %v2743_v32 }
  0x4d   :  { %933 = vmatpush.bf16.msra.mxu0 %v2675_v33  ;;  %959 = vmatpush.bf16.msra.mxu2 %v2683_v36 }
  0x4e   :  { %972 = vmatpush.bf16.msra.mxu3 %v2687_v37 }
  0x4f   :  { %946 = vmatpush.bf16.msra.mxu1 %v2679_v44 }
  0x51   :  { %934 = vmatpush.bf16.msra.mxu0 %v2611_v45  ;;  %960 = vmatpush.bf16.msra.mxu2 %v2619_v48 }
  0x52   :  { %973 = vmatpush.bf16.msra.mxu3 %v2623_v49 }
  0x53   :  { %947 = vmatpush.bf16.msra.mxu1 %v2615_v56 }
  0x55   :  { %935 = vmatpush.bf16.msra.mxu0 %v2547_v57  ;;  %961 = vmatpush.bf16.msra.mxu2 %v2555_v60 }
  0x56   :  { %974 = vmatpush.bf16.msra.mxu3 %v2559_v61 }
  0x57   :  { %10 = vsyncpa [#allocation3], 0  ;;  %948 = vmatpush.bf16.msra.mxu1 %v2551_v5  ;;  %v2487_v17 = vor.u32 %v3380_v7, %v2484_v8  ;;  %v3364_v18 = vld [vmem:[%s4865_s1 + $0xa4] sm:$0xf]  ;;  %v2419_v19 = vor.u32 %v3372_v12, %v2418_v9  ;;  %v2354_v21 = vld [vmem:[%s4865_s1 + $0x20] sm:$0xf]  ;;  %v2427_v23 = vor.u32 %v3373_v14, %v2426_v13  ;;  %v2431_v24 = vor.u32 %v3365_v15, %v2428_v16 }
  0x58   :  { %v2420_v20 = vld [vmem:[%s4865_s1 + $0xe0] sm:$0xf0]  ;;  %v3356_v22 = vld [vmem:[%s4865_s1 + $0x5c] sm:$0xf0]  ;;  %v2362_v25 = vld [vmem:[%s4865_s1 + $0x28] sm:$0xf] }
  0x59   :  { %936 = vmatpush.bf16.msra.mxu0 %v2483_v6  ;;  %962 = vmatpush.bf16.msra.mxu2 %v2491_v10  ;;  %v3357_v26 = vld [vmem:[%s4865_s1 + $0x64] sm:$0xf0]  ;;  %v3349_v27 = vld [vmem:[%s4865_s1 + $0x2c] sm:$0xf]  ;;  %v2818_v29 = vld [vmem:[%s4865_s1 + $0x3b0] sm:$0xf]  ;;  %v2423_v31 = vor.u32 %v3364_v18, %v2420_v20  ;;  %v2355_v35 = vor.u32 %v3356_v22, %v2354_v21 }
  0x5a   :  { %975 = vmatpush.bf16.msra.mxu3 %v2495_v11  ;;  %v2364_v28 = vld [vmem:[%s4865_s1 + $0x68] sm:$0xf0]  ;;  %v3470_v30 = vld [vmem:[%s4865_s1 + $0x3ec] sm:$0xf0]  ;;  %v2826_v32 = vld [vmem:[%s4865_s1 + $0x3b8] sm:$0xf]  ;;  %v2363_v39 = vor.u32 %v3357_v26, %v2362_v25 }
  0x5b   :  { %949 = vmatpush.bf16.msra.mxu1 %v2487_v17  ;;  %v3471_v33 = vld [vmem:[%s4865_s1 + $0x3f4] sm:$0xf0]  ;;  %v3463_v34 = vld [vmem:[%s4865_s1 + $0x3bc] sm:$0xf]  ;;  %v3348_v37 = vld [vmem:[%s4865_s1 + $0x24] sm:$0xf]  ;;  %v2367_v40 = vor.u32 %v3349_v27, %v2364_v28  ;;  %v2819_v41 = vor.u32 %v3470_v30, %v2818_v29 }
  0x5c   :  { %v2828_v36 = vld [vmem:[%s4865_s1 + $0x3f8] sm:$0xf0]  ;;  %v2356_v38 = vld [vmem:[%s4865_s1 + $0x60] sm:$0xf0]  ;;  %v2827_v42 = vor.u32 %v3471_v33, %v2826_v32  ;;  %v3462_v43 = vld [vmem:[%s4865_s1 + $0x3b4] sm:$0xf] }
  0x5d   :  { %937 = vmatpush.bf16.msra.mxu0 %v2419_v19  ;;  %963 = vmatpush.bf16.msra.mxu2 %v2427_v23  ;;  %v2820_v44 = vld [vmem:[%s4865_s1 + $0x3f0] sm:$0xf0]  ;;  %v2831_v45 = vor.u32 %v3463_v34, %v2828_v36  ;;  %v2359_v46 = vor.u32 %v3348_v37, %v2356_v38  ;;  %v2754_v47 = vld [vmem:[%s4865_s1 + $0x330] sm:$0xf]  ;;  %v2762_v49 = vld [vmem:[%s4865_s1 + $0x338] sm:$0xf] }
  0x5e   :  { %976 = vmatpush.bf16.msra.mxu3 %v2431_v24  ;;  %v3454_v48 = vld [vmem:[%s4865_s1 + $0x36c] sm:$0xf0]  ;;  %v3455_v50 = vld [vmem:[%s4865_s1 + $0x374] sm:$0xf0]  ;;  %v3447_v51 = vld [vmem:[%s4865_s1 + $0x33c] sm:$0xf]  ;;  %v2823_v53 = vor.u32 %v3462_v43, %v2820_v44 }
  0x5f   :  { %950 = vmatpush.bf16.msra.mxu1 %v2423_v31  ;;  %v2764_v52 = vld [vmem:[%s4865_s1 + $0x378] sm:$0xf0]  ;;  %v2755_v54 = vor.u32 %v3454_v48, %v2754_v47  ;;  %v3446_v55 = vld [vmem:[%s4865_s1 + $0x334] sm:$0xf]  ;;  %v2763_v57 = vor.u32 %v3455_v50, %v2762_v49  ;;  %v2690_v59 = vld [vmem:[%s4865_s1 + $0x2b0] sm:$0xf] }
  0x60   :  { %v2756_v56 = vld [vmem:[%s4865_s1 + $0x370] sm:$0xf0]  ;;  %v2767_v58 = vor.u32 %v3447_v51, %v2764_v52  ;;  %v3438_v60 = vld [vmem:[%s4865_s1 + $0x2ec] sm:$0xf0]  ;;  %v2698_v61 = vld [vmem:[%s4865_s1 + $0x2b8] sm:$0xf] }
  0x61   :  { %938 = vmatpush.bf16.msra.mxu0 %v2355_v35  ;;  %964 = vmatpush.bf16.msra.mxu2 %v2363_v39  ;;  %v3439_v62 = vld [vmem:[%s4865_s1 + $0x2f4] sm:$0xf0]  ;;  %v3431_v0 = vld [vmem:[%s4865_s1 + $0x2bc] sm:$0xf]  ;;  %v2759_v2 = vor.u32 %v3446_v55, %v2756_v56  ;;  %v2691_v3 = vor.u32 %v3438_v60, %v2690_v59  ;;  %v3430_v4 = vld [vmem:[%s4865_s1 + $0x2b4] sm:$0xf] }
  0x62   :  { %977 = vmatpush.bf16.msra.mxu3 %v2367_v40  ;;  %v2700_v1 = vld [vmem:[%s4865_s1 + $0x2f8] sm:$0xf0]  ;;  %v2692_v5 = vld [vmem:[%s4865_s1 + $0x2f0] sm:$0xf0]  ;;  %v2699_v6 = vor.u32 %v3439_v62, %v2698_v61  ;;  %v2626_v8 = vld [vmem:[%s4865_s1 + $0x230] sm:$0xf] }
  0x63   :  { %951 = vmatpush.bf16.msra.mxu1 %v2359_v46  ;;  %v2703_v7 = vor.u32 %v3431_v0, %v2700_v1  ;;  %v3422_v9 = vld [vmem:[%s4865_s1 + $0x26c] sm:$0xf0]  ;;  %v2634_v10 = vld [vmem:[%s4865_s1 + $0x238] sm:$0xf]  ;;  %v3415_v12 = vld [vmem:[%s4865_s1 + $0x23c] sm:$0xf]  ;;  %v2695_v14 = vor.u32 %v3430_v4, %v2692_v5 }
  0x64   :  { %939 = vmatmul.bf16.vlgmr.msra.gmra.mxu0 %v3920_v63  ;;  %965 = vmatmul.bf16.vlgmr.msra.gmra.mxu2 %v3920_v63  ;;  %v3423_v11 = vld [vmem:[%s4865_s1 + $0x274] sm:$0xf0]  ;;  %v2636_v13 = vld [vmem:[%s4865_s1 + $0x278] sm:$0xf0]  ;;  %v2627_v15 = vor.u32 %v3422_v9, %v2626_v8  ;;  %v3414_v16 = vld [vmem:[%s4865_s1 + $0x234] sm:$0xf] }
  0x65   :  { %983 = vmatpush.bf16.msrb.mxu0 %v2819_v41  ;;  %1009 = vmatpush.bf16.msrb.mxu2 %v2827_v42  ;;  %v2628_v17 = vld [vmem:[%s4865_s1 + $0x270] sm:$0xf0]  ;;  %v2635_v18 = vor.u32 %v3423_v11, %v2634_v10  ;;  %v2639_v19 = vor.u32 %v3415_v12, %v2636_v13  ;;  %v2562_v20 = vld [vmem:[%s4865_s1 + $0x1b0] sm:$0xf]  ;;  %v2570_v22 = vld [vmem:[%s4865_s1 + $0x1b8] sm:$0xf] }
  0x66   :  { %1022 = vmatpush.bf16.msrb.mxu3 %v2831_v45  ;;  %952 = vmatmul.bf16.vlgmr.msra.gmra.mxu1 %v3920_v63  ;;  %v3406_v21 = vld [vmem:[%s4865_s1 + $0x1ec] sm:$0xf0]  ;;  %v3407_v23 = vld [vmem:[%s4865_s1 + $0x1f4] sm:$0xf0]  ;;  %v3399_v24 = vld [vmem:[%s4865_s1 + $0x1bc] sm:$0xf]  ;;  %v2631_v26 = vor.u32 %v3414_v16, %v2628_v17 }
  0x67   :  { %996 = vmatpush.bf16.msrb.mxu1 %v2823_v53  ;;  %978 = vmatmul.bf16.vlgmr.msra.gmra.mxu3 %v3920_v63  ;;  %v2572_v25 = vld [vmem:[%s4865_s1 + $0x1f8] sm:$0xf0]  ;;  %v2563_v27 = vor.u32 %v3406_v21, %v2562_v20  ;;  %v3398_v28 = vld [vmem:[%s4865_s1 + $0x1b4] sm:$0xf]  ;;  %v2571_v30 = vor.u32 %v3407_v23, %v2570_v22  ;;  %v2498_v32 = vld [vmem:[%s4865_s1 + $0x130] sm:$0xf] }
  0x68   :  { %v2564_v29 = vld [vmem:[%s4865_s1 + $0x1f0] sm:$0xf0]  ;;  %v2575_v31 = vor.u32 %v3399_v24, %v2572_v25  ;;  %v3390_v33 = vld [vmem:[%s4865_s1 + $0x16c] sm:$0xf0]  ;;  %v2506_v34 = vld [vmem:[%s4865_s1 + $0x138] sm:$0xf] }
  0x69   :  { %984 = vmatpush.bf16.msrb.mxu0 %v2755_v54  ;;  %1010 = vmatpush.bf16.msrb.mxu2 %v2763_v57  ;;  %v3391_v35 = vld [vmem:[%s4865_s1 + $0x174] sm:$0xf0]  ;;  %v3383_v36 = vld [vmem:[%s4865_s1 + $0x13c] sm:$0xf]  ;;  %v2567_v38 = vor.u32 %v3398_v28, %v2564_v29  ;;  %v2499_v39 = vor.u32 %v3390_v33, %v2498_v32  ;;  %v3382_v40 = vld [vmem:[%s4865_s1 + $0x134] sm:$0xf] }
  0x6a   :  { %1023 = vmatpush.bf16.msrb.mxu3 %v2767_v58  ;;  %v2508_v37 = vld [vmem:[%s4865_s1 + $0x178] sm:$0xf0]  ;;  %v2500_v41 = vld [vmem:[%s4865_s1 + $0x170] sm:$0xf0]  ;;  %v2507_v42 = vor.u32 %v3391_v35, %v2506_v34  ;;  %v2434_v44 = vld [vmem:[%s4865_s1 + $0xb0] sm:$0xf] }
  0x6b   :  { %997 = vmatpush.bf16.msrb.mxu1 %v2759_v2  ;;  %v2511_v43 = vor.u32 %v3383_v36, %v2508_v37  ;;  %v3374_v45 = vld [vmem:[%s4865_s1 + $0xec] sm:$0xf0]  ;;  %v2442_v46 = vld [vmem:[%s4865_s1 + $0xb8] sm:$0xf]  ;;  %v3367_v48 = vld [vmem:[%s4865_s1 + $0xbc] sm:$0xf]  ;;  %v2503_v50 = vor.u32 %v3382_v40, %v2500_v41 }
  0x6c   :  { %v3375_v47 = vld [vmem:[%s4865_s1 + $0xf4] sm:$0xf0]  ;;  %v2444_v49 = vld [vmem:[%s4865_s1 + $0xf8] sm:$0xf0]  ;;  %v2435_v51 = vor.u32 %v3374_v45, %v2434_v44  ;;  %v3366_v52 = vld [vmem:[%s4865_s1 + $0xb4] sm:$0xf] }
  0x6d   :  { %985 = vmatpush.bf16.msrb.mxu0 %v2691_v3  ;;  %1011 = vmatpush.bf16.msrb.mxu2 %v2699_v6  ;;  %v2436_v53 = vld [vmem:[%s4865_s1 + $0xf0] sm:$0xf0]  ;;  %v2443_v54 = vor.u32 %v3375_v47, %v2442_v46  ;;  %v2447_v55 = vor.u32 %v3367_v48, %v2444_v49  ;;  %v2370_v56 = vld [vmem:[%s4865_s1 + $0x30] sm:$0xf]  ;;  %v2378_v58 = vld [vmem:[%s4865_s1 + $0x38] sm:$0xf] }
  0x6e   :  { %1024 = vmatpush.bf16.msrb.mxu3 %v2703_v7  ;;  %v3358_v57 = vld [vmem:[%s4865_s1 + $0x6c] sm:$0xf0]  ;;  %v3359_v59 = vld [vmem:[%s4865_s1 + $0x74] sm:$0xf0]  ;;  %v3351_v60 = vld [vmem:[%s4865_s1 + $0x3c] sm:$0xf]  ;;  %v2439_v62 = vor.u32 %v3366_v52, %v2436_v53 }
  0x6f   :  { %998 = vmatpush.bf16.msrb.mxu1 %v2695_v14  ;;  %v2380_v61 = vld [vmem:[%s4865_s1 + $0x78] sm:$0xf0]  ;;  %v2371_v0 = vor.u32 %v3358_v57, %v2370_v56  ;;  %v3350_v1 = vld [vmem:[%s4865_s1 + $0x34] sm:$0xf]  ;;  %v2379_v3 = vor.u32 %v3359_v59, %v2378_v58  ;;  %v3477_v14 = vld [vmem:[%s4867_s3 + $0x28] sm:$0xff]  ;;  %s2311_s11 = sshll.u32 %s4869_s5, 4  ;;  %s2312_s11 = int_to_ptr.hbm [resolvable:$true] %s2311_s11 }
  0x70   :  { %v2372_v2 = vld [vmem:[%s4865_s1 + $0x70] sm:$0xf0]  ;;  %v2383_v4 = vor.u32 %v3351_v60, %v2380_v61  ;;  %v3479_v5 = vld [vmem:[%s4867_s3 + $0x38] sm:$0xff]  ;;  %v3485_v16 = vld [vmem:[%s4867_s3 + $0x68] sm:$0xff] }
  0x71   :  { %986 = vmatpush.bf16.msrb.mxu0 %v2627_v15  ;;  %1012 = vmatpush.bf16.msrb.mxu2 %v2635_v18  ;;  %v3495_v6 = vld [vmem:[%s4867_s3 + $0xb8] sm:$0xff]  ;;  %v2375_v7 = vor.u32 %v3350_v1, %v2372_v2  ;;  %v3478_v10 = vld [vmem:[%s4867_s3 + $0x30] sm:$0xff]  ;;  %v3493_v15 = vld [vmem:[%s4867_s3 + $0xa8] sm:$0xff] }
  0x72   :  { %1025 = vmatpush.bf16.msrb.mxu3 %v2639_v19  ;;  %v3487_v8 = vld [vmem:[%s4867_s3 + $0x78] sm:$0xff]  ;;  %v3494_v11 = vld [vmem:[%s4867_s3 + $0xb0] sm:$0xff]  ;;  %v3476_v17 = vld [vmem:[%s4867_s3 + $0x20] sm:$0xff] }
  0x73   :  { %999 = vmatpush.bf16.msrb.mxu1 %v2631_v26  ;;  %v3503_v9 = vld [vmem:[%s4867_s3 + $0xf8] sm:$0xff]  ;;  %v3486_v12 = vld [vmem:[%s4867_s3 + $0x70] sm:$0xff]  ;;  %v3492_v18 = vld [vmem:[%s4867_s3 + $0xa0] sm:$0xff] }
  0x74   :  { %v3502_v13 = vld [vmem:[%s4867_s3 + $0xf0] sm:$0xff]  ;;  %v3484_v19 = vld [vmem:[%s4867_s3 + $0x60] sm:$0xff]  ;;  %v3475_v21 = vld [vmem:[%s4867_s3 + $0x18] sm:$0xff] }
  0x75   :  { %987 = vmatpush.bf16.msrb.mxu0 %v2563_v27  ;;  %1013 = vmatpush.bf16.msrb.mxu2 %v2571_v30  ;;  %v3500_v20 = vld [vmem:[%s4867_s3 + $0xe0] sm:$0xff]  ;;  %v3491_v22 = vld [vmem:[%s4867_s3 + $0x98] sm:$0xff]  ;;  %v3474_v25 = vld [vmem:[%s4867_s3 + $0x10] sm:$0xff] }
  0x76   :  { %1026 = vmatpush.bf16.msrb.mxu3 %v2575_v31  ;;  %v3483_v23 = vld [vmem:[%s4867_s3 + $0x58] sm:$0xff]  ;;  %v3490_v26 = vld [vmem:[%s4867_s3 + $0x90] sm:$0xff]  ;;  %v3473_v29 = vld [vmem:[%s4867_s3 + $0x8] sm:$0xff] }
  0x77   :  { %1000 = vmatpush.bf16.msrb.mxu1 %v2567_v38  ;;  %v3499_v24 = vld [vmem:[%s4867_s3 + $0xd8] sm:$0xff]  ;;  %v3482_v27 = vld [vmem:[%s4867_s3 + $0x50] sm:$0xff]  ;;  %v3489_v30 = vld [vmem:[%s4867_s3 + $0x88] sm:$0xff] }
  0x78   :  { %v3498_v28 = vld [vmem:[%s4867_s3 + $0xd0] sm:$0xff]  ;;  %v3481_v31 = vld [vmem:[%s4867_s3 + $0x48] sm:$0xff]  ;;  %v3472_v33 = vld [vmem:[%s4867_s3] sm:$0xff] }
  0x79   :  { %988 = vmatpush.bf16.msrb.mxu0 %v2499_v39  ;;  %1014 = vmatpush.bf16.msrb.mxu2 %v2507_v42  ;;  %v3497_v32 = vld [vmem:[%s4867_s3 + $0xc8] sm:$0xff]  ;;  %v3511_v34 = vld [vmem:[%s4867_s3 + $0x138] sm:$0xff]  ;;  %v3488_v35 = vld [vmem:[%s4867_s3 + $0x80] sm:$0xff] }
  0x7a   :  { %1027 = vmatpush.bf16.msrb.mxu3 %v2511_v43  ;;  %v3527_v36 = vld [vmem:[%s4867_s3 + $0x1b8] sm:$0xff]  ;;  %v3480_v37 = vld [vmem:[%s4867_s3 + $0x40] sm:$0xff]  ;;  %v3510_v41 = vld [vmem:[%s4867_s3 + $0x130] sm:$0xff] }
  0x7b   :  { %1001 = vmatpush.bf16.msrb.mxu1 %v2503_v50  ;;  %v3496_v38 = vld [vmem:[%s4867_s3 + $0xc0] sm:$0xff]  ;;  %v3519_v39 = vld [vmem:[%s4867_s3 + $0x178] sm:$0xff]  ;;  %v3526_v42 = vld [vmem:[%s4867_s3 + $0x1b0] sm:$0xff] }
  0x7c   :  { %v3535_v40 = vld [vmem:[%s4867_s3 + $0x1f8] sm:$0xff]  ;;  %v3518_v43 = vld [vmem:[%s4867_s3 + $0x170] sm:$0xff]  ;;  %v3509_v45 = vld [vmem:[%s4867_s3 + $0x128] sm:$0xff] }
  0x7d   :  { %989 = vmatpush.bf16.msrb.mxu0 %v2435_v51  ;;  %1015 = vmatpush.bf16.msrb.mxu2 %v2443_v54  ;;  %v3534_v44 = vld [vmem:[%s4867_s3 + $0x1f0] sm:$0xff]  ;;  %v3525_v46 = vld [vmem:[%s4867_s3 + $0x1a8] sm:$0xff]  ;;  %v3508_v49 = vld [vmem:[%s4867_s3 + $0x120] sm:$0xff] }
  0x7e   :  { %1028 = vmatpush.bf16.msrb.mxu3 %v2447_v55  ;;  %v3517_v47 = vld [vmem:[%s4867_s3 + $0x168] sm:$0xff]  ;;  %v3524_v50 = vld [vmem:[%s4867_s3 + $0x1a0] sm:$0xff]  ;;  %v3507_v56 = vld [vmem:[%s4867_s3 + $0x118] sm:$0xff] }
  0x7f   :  { %1002 = vmatpush.bf16.msrb.mxu1 %v2439_v62  ;;  %v3533_v48 = vld [vmem:[%s4867_s3 + $0x1e8] sm:$0xff]  ;;  %v4589_v51 = vld [vmem:[%s4866_s2] sm:$0xff]  ;;  %v3523_v57 = vld [vmem:[%s4867_s3 + $0x198] sm:$0xff] }
  0x80   :  { %v3516_v52 = vld [vmem:[%s4867_s3 + $0x160] sm:$0xff]  ;;  %v155_v54 = vperm.slane %v4589_v51, 0  ;;  %v156_v55 = vperm.slane %v4589_v51, 1  ;;  %v157_v60 = vperm.slane %v4589_v51, 2  ;;  %v3515_v61 = vld [vmem:[%s4867_s3 + $0x158] sm:$0xff]  ;;  %v158_v2 = vperm.slane %v4589_v51, 3 }
  0x81   :  { %990 = vmatpush.bf16.msrb.mxu0 %v2371_v0  ;;  %1016 = vmatpush.bf16.msrb.mxu2 %v2379_v3  ;;  %v3532_v53 = vld [vmem:[%s4867_s3 + $0x1e0] sm:$0xff]  ;;  %v3531_v1 = vld [vmem:[%s4867_s3 + $0x1d8] sm:$0xff]  ;;  %v3506_v3 = vld [vmem:[%s4867_s3 + $0x110] sm:$0xff] }
  0x82   :  { %1029 = vmatpush.bf16.msrb.mxu3 %v2383_v4 }
  0x83   :  { %1003 = vmatpush.bf16.msrb.mxu1 %v2375_v7 }
  0x84   :  { %991 = vmatmul.bf16.vlgmr.msrb.gmra.mxu0 %v3920_v63  ;;  %1017 = vmatmul.bf16.vlgmr.msrb.gmra.mxu2 %v3920_v63 }
  0x85   :  { %2095 = vmatpush.bf16.msra.mxu0 %v3479_v5  ;;  %2121 = vmatpush.bf16.msra.mxu2 %v3495_v6  ;;  %v3522_v6 = vld [vmem:[%s4867_s3 + $0x190] sm:$0xff] }
  0x86   :  { %1030 = vmatmul.bf16.vlgmr.msrb.gmra.mxu3 %v3920_v63  ;;  %1004 = vmatmul.bf16.vlgmr.msrb.gmra.mxu1 %v3920_v63  ;;  %v3501_v63 = vld [vmem:[%s4867_s3 + $0xe8] sm:$0xff] }
  0x87   :  { %2108 = vmatpush.bf16.msra.mxu1 %v3487_v8  ;;  %2134 = vmatpush.bf16.msra.mxu3 %v3503_v9 }
  0x89   :  { %2096 = vmatpush.bf16.msra.mxu0 %v3478_v10  ;;  %2122 = vmatpush.bf16.msra.mxu2 %v3494_v11 }
  0x8b   :  { %2109 = vmatpush.bf16.msra.mxu1 %v3486_v12  ;;  %2135 = vmatpush.bf16.msra.mxu3 %v3502_v13  ;;  %v3514_v12 = vld [vmem:[%s4867_s3 + $0x150] sm:$0xff] }
  0x8c   :  { %v3530_v13 = vld [vmem:[%s4867_s3 + $0x1d0] sm:$0xff] }
  0x8d   :  { %2097 = vmatpush.bf16.msra.mxu0 %v3477_v14  ;;  %2123 = vmatpush.bf16.msra.mxu2 %v3493_v15  ;;  %v3505_v15 = vld [vmem:[%s4867_s3 + $0x108] sm:$0xff] }
  0x8f   :  { %2110 = vmatpush.bf16.msra.mxu1 %v3485_v16  ;;  %2136 = vmatpush.bf16.msra.mxu3 %v3501_v63 }
  0x91   :  { %2098 = vmatpush.bf16.msra.mxu0 %v3476_v17  ;;  %2124 = vmatpush.bf16.msra.mxu2 %v3492_v18 }
  0x93   :  { %2111 = vmatpush.bf16.msra.mxu1 %v3484_v19  ;;  %2137 = vmatpush.bf16.msra.mxu3 %v3500_v20  ;;  %v3521_v19 = vld [vmem:[%s4867_s3 + $0x188] sm:$0xff] }
  0x95   :  { %2099 = vmatpush.bf16.msra.mxu0 %v3475_v21  ;;  %2125 = vmatpush.bf16.msra.mxu2 %v3491_v22  ;;  %v3513_v21 = vld [vmem:[%s4867_s3 + $0x148] sm:$0xff] }
  0x96   :  { %v3529_v22 = vld [vmem:[%s4867_s3 + $0x1c8] sm:$0xff] }
  0x97   :  { %2112 = vmatpush.bf16.msra.mxu1 %v3483_v23  ;;  %2138 = vmatpush.bf16.msra.mxu3 %v3499_v24  ;;  %v3504_v24 = vld [vmem:[%s4867_s3 + $0x100] sm:$0xff] }
  0x99   :  { %2100 = vmatpush.bf16.msra.mxu0 %v3474_v25  ;;  %2126 = vmatpush.bf16.msra.mxu2 %v3490_v26  ;;  %v3543_v25 = vld [vmem:[%s4867_s3 + $0x238] sm:$0xff] }
  0x9b   :  { %2113 = vmatpush.bf16.msra.mxu1 %v3482_v27  ;;  %2139 = vmatpush.bf16.msra.mxu3 %v3498_v28  ;;  %v3520_v27 = vld [vmem:[%s4867_s3 + $0x180] sm:$0xff] }
  0x9d   :  { %2101 = vmatpush.bf16.msra.mxu0 %v3473_v29  ;;  %2127 = vmatpush.bf16.msra.mxu2 %v3489_v30  ;;  %v3512_v29 = vld [vmem:[%s4867_s3 + $0x140] sm:$0xff] }
  0x9e   :  { %v3528_v30 = vld [vmem:[%s4867_s3 + $0x1c0] sm:$0xff] }
  0x9f   :  { %2114 = vmatpush.bf16.msra.mxu1 %v3481_v31  ;;  %2140 = vmatpush.bf16.msra.mxu3 %v3497_v32  ;;  %v3551_v31 = vld [vmem:[%s4867_s3 + $0x278] sm:$0xff] }
  0xa0   :  { %v3559_v32 = vld [vmem:[%s4867_s3 + $0x2b8] sm:$0xff] }
  0xa1   :  { %2102 = vmatpush.bf16.msra.mxu0 %v3472_v33  ;;  %2128 = vmatpush.bf16.msra.mxu2 %v3488_v35  ;;  %v836_v58 = vpop.f32.mrf.mxu0  ;;  %v3542_v33 = vld [vmem:[%s4867_s3 + $0x230] sm:$0xff] }
  0xa2   :  { %v837_v62 = vadd.f32 %v836_v58, %v155_v54  ;;  %v3550_v35 = vld [vmem:[%s4867_s3 + $0x270] sm:$0xff]  ;;  %v3555_v58 = vld [vmem:[%s4867_s3 + $0x298] sm:$0xff] }
  0xa3   :  { %2115 = vmatpush.bf16.msra.mxu1 %v3480_v37  ;;  %2141 = vmatpush.bf16.msra.mxu3 %v3496_v38  ;;  %v849_v59 = vpop.f32.mrf.mxu1  ;;  %v3541_v37 = vld [vmem:[%s4867_s3 + $0x228] sm:$0xff]  ;;  %v3566_v38 = vld [vmem:[%s4867_s3 + $0x2f0] sm:$0xff] }
  0xa4   :  { %v850_v0 = vadd.f32 %v849_v59, %v156_v55  ;;  %v1035_v4 = vmax.f32 %v837_v62, 0.0 }
  0xa5   :  { %2147 = vmatpush.bf16.msrb.mxu0 %v3511_v34  ;;  %2173 = vmatpush.bf16.msrb.mxu2 %v3527_v36  ;;  %v3567_v34 = vld [vmem:[%s4867_s3 + $0x2f8] sm:$0xff]  ;;  %v3558_v36 = vld [vmem:[%s4867_s3 + $0x2b0] sm:$0xff] }
  0xa6   :  { %v1036_v5 = vmax.f32 %v850_v0, 0.0  ;;  %v1051_v9 = vpack.c.bf16 %v1035_v4, %v1035_v4  ;;  %v3538_v0 = vld [vmem:[%s4867_s3 + $0x210] sm:$0xff] }
  0xa7   :  { %2160 = vmatpush.bf16.msrb.mxu1 %v3519_v39  ;;  %2186 = vmatpush.bf16.msrb.mxu3 %v3535_v40  ;;  %v862_v7 = vpop.f32.mrf.mxu2  ;;  %v3549_v39 = vld [vmem:[%s4867_s3 + $0x268] sm:$0xff] }
  0xa8   :  { %v863_v8 = vadd.f32 %v862_v7, %v157_v60  ;;  %v1052_v11 = vpack.c.bf16 %v1036_v5, %v1036_v5  ;;  %2103 = vmatmul.bf16.vlgmr.msra.gmra.mxu0 %v1051_v9  ;;  %v3557_v40 = vld [vmem:[%s4867_s3 + $0x2a8] sm:$0xff] }
  0xa9   :  { %2148 = vmatpush.bf16.msrb.mxu0 %v3510_v41  ;;  %2174 = vmatpush.bf16.msrb.mxu2 %v3526_v42  ;;  %v838_v17 = vpop.f32.mrf.mxu0  ;;  %v3540_v41 = vld [vmem:[%s4867_s3 + $0x220] sm:$0xff]  ;;  %v3565_v42 = vld [vmem:[%s4867_s3 + $0x2e8] sm:$0xff] }
  0xaa   :  { %v875_v10 = vpop.f32.mrf.mxu3  ;;  %v1037_v16 = vmax.f32 %v863_v8, 0.0  ;;  %2116 = vmatmul.bf16.vlgmr.msra.gmra.mxu1 %v1052_v11  ;;  %v3554_v8 = vld [vmem:[%s4867_s3 + $0x290] sm:$0xff]  ;;  %v3536_v17 = vld [vmem:[%s4867_s3 + $0x200] sm:$0xff] }
  0xab   :  { %2161 = vmatpush.bf16.msrb.mxu1 %v3518_v43  ;;  %2187 = vmatpush.bf16.msrb.mxu3 %v3534_v44  ;;  %v876_v14 = vadd.f32 %v875_v10, %v158_v2  ;;  %v851_v18 = vpop.f32.mrf.mxu1  ;;  %v159_v43 = vperm.slane %v4589_v51, 4  ;;  %v160_v44 = vperm.slane %v4589_v51, 5 }
  0xac   :  { %v1053_v20 = vpack.c.bf16 %v1037_v16, %v1037_v16  ;;  %v3561_v18 = vld [vmem:[%s4867_s3 + $0x2c8] sm:$0xff] }
  0xad   :  { %2149 = vmatpush.bf16.msrb.mxu0 %v3509_v45  ;;  %2175 = vmatpush.bf16.msrb.mxu2 %v3525_v46  ;;  %v1038_v63 = vmax.f32 %v876_v14, 0.0  ;;  %v3548_v45 = vld [vmem:[%s4867_s3 + $0x260] sm:$0xff] }
  0xae   :  { %2129 = vmatmul.bf16.vlgmr.msra.gmra.mxu2 %v1053_v20  ;;  %v3556_v46 = vld [vmem:[%s4867_s3 + $0x2a0] sm:$0xff] }
  0xaf   :  { %2162 = vmatpush.bf16.msrb.mxu1 %v3517_v47  ;;  %2188 = vmatpush.bf16.msrb.mxu3 %v3533_v48  ;;  %v1054_v23 = vpack.c.bf16 %v1038_v63, %v1038_v63  ;;  %v864_v26 = vpop.f32.mrf.mxu2  ;;  %v161_v47 = vperm.slane %v4589_v51, 6  ;;  %v3539_v48 = vld [vmem:[%s4867_s3 + $0x218] sm:$0xff]  ;;  %v3553_v63 = vld [vmem:[%s4867_s3 + $0x288] sm:$0xff]  ;;  %v3544_v20 = vld [vmem:[%s4867_s3 + $0x240] sm:$0xff] }
  0xb0   :  { %v3599_v26 = vld [vmem:[%s4867_s3 + $0x3f8] sm:$0xff] }
  0xb1   :  { %2150 = vmatpush.bf16.msrb.mxu0 %v3508_v49  ;;  %2176 = vmatpush.bf16.msrb.mxu2 %v3524_v50  ;;  %v3564_v49 = vld [vmem:[%s4867_s3 + $0x2e0] sm:$0xff] }
  0xb2   :  { %2142 = vmatmul.bf16.vlgmr.msra.gmra.mxu3 %v1054_v23  ;;  %v877_v28 = vpop.f32.mrf.mxu3  ;;  %v3560_v23 = vld [vmem:[%s4867_s3 + $0x2c0] sm:$0xff] }
  0xb3   :  { %2163 = vmatpush.bf16.msrb.mxu1 %v3516_v52  ;;  %2189 = vmatpush.bf16.msrb.mxu3 %v3532_v53  ;;  %v162_v52 = vperm.slane %v4589_v51, 7  ;;  %v4770_v28 = vld [vmem:[%s4866_s2 + $0x8] sm:$0xff] }
  0xb5   :  { %2151 = vmatpush.bf16.msrb.mxu0 %v3507_v56  ;;  %2177 = vmatpush.bf16.msrb.mxu2 %v3523_v57  ;;  %v3547_v57 = vld [vmem:[%s4867_s3 + $0x258] sm:$0xff] }
  0xb7   :  { %2164 = vmatpush.bf16.msrb.mxu1 %v3515_v61  ;;  %2190 = vmatpush.bf16.msrb.mxu3 %v3531_v1  ;;  %v3563_v1 = vld [vmem:[%s4867_s3 + $0x2d8] sm:$0xff] }
  0xb9   :  { %2152 = vmatpush.bf16.msrb.mxu0 %v3506_v3  ;;  %2178 = vmatpush.bf16.msrb.mxu2 %v3522_v6  ;;  %v3546_v6 = vld [vmem:[%s4867_s3 + $0x250] sm:$0xff] }
  0xbb   :  { %2165 = vmatpush.bf16.msrb.mxu1 %v3514_v12  ;;  %2191 = vmatpush.bf16.msrb.mxu3 %v3530_v13  ;;  %v3537_v12 = vld [vmem:[%s4867_s3 + $0x208] sm:$0xff]  ;;  %v3562_v13 = vld [vmem:[%s4867_s3 + $0x2d0] sm:$0xff] }
  0xbd   :  { %2153 = vmatpush.bf16.msrb.mxu0 %v3505_v15  ;;  %2179 = vmatpush.bf16.msrb.mxu2 %v3521_v19  ;;  %v3545_v15 = vld [vmem:[%s4867_s3 + $0x248] sm:$0xff]  ;;  %v3575_v19 = vld [vmem:[%s4867_s3 + $0x338] sm:$0xff] }
  0xbf   :  { %2166 = vmatpush.bf16.msrb.mxu1 %v3513_v21  ;;  %2192 = vmatpush.bf16.msrb.mxu3 %v3529_v22  ;;  %v3583_v21 = vld [vmem:[%s4867_s3 + $0x378] sm:$0xff]  ;;  %v3552_v22 = vld [vmem:[%s4867_s3 + $0x280] sm:$0xff] }
  0xc1   :  { %2154 = vmatpush.bf16.msrb.mxu0 %v3504_v24  ;;  %2180 = vmatpush.bf16.msrb.mxu2 %v3520_v27  ;;  %v888_v50 = vpop.f32.mrf.mxu0  ;;  %v3591_v24 = vld [vmem:[%s4867_s3 + $0x3b8] sm:$0xff]  ;;  %v3582_v27 = vld [vmem:[%s4867_s3 + $0x370] sm:$0xff] }
  0xc2   :  { %v889_v54 = vadd.f32 %v888_v50, %v159_v43 }
  0xc3   :  { %2167 = vmatpush.bf16.msrb.mxu1 %v3512_v29  ;;  %2193 = vmatpush.bf16.msrb.mxu3 %v3528_v30  ;;  %v901_v53 = vpop.f32.mrf.mxu1  ;;  %v3590_v29 = vld [vmem:[%s4867_s3 + $0x3b0] sm:$0xff]  ;;  %v3573_v30 = vld [vmem:[%s4867_s3 + $0x328] sm:$0xff] }
  0xc4   :  { %v902_v55 = vadd.f32 %v901_v53, %v160_v44  ;;  %v1039_v60 = vmax.f32 %v889_v54, 0.0  ;;  %v3579_v53 = vld [vmem:[%s4867_s3 + $0x358] sm:$0xff] }
  0xc5   :  { %2199 = vmatpush.bf16.msra.mxu0 %v3543_v25  ;;  %2225 = vmatpush.bf16.msra.mxu2 %v3559_v32  ;;  %v3574_v25 = vld [vmem:[%s4867_s3 + $0x330] sm:$0xff]  ;;  %v163_v32 = vperm.slane %v4770_v28, 0  ;;  %v3587_v54 = vld [vmem:[%s4867_s3 + $0x398] sm:$0xff] }
  0xc6   :  { %v1040_v62 = vmax.f32 %v902_v55, 0.0  ;;  %v1055_v3 = vpack.c.bf16 %v1039_v60, %v1039_v60 }
  0xc7   :  { %2212 = vmatpush.bf16.msra.mxu1 %v3551_v31  ;;  %2238 = vmatpush.bf16.msra.mxu3 %v3567_v34  ;;  %v914_v56 = vpop.f32.mrf.mxu2  ;;  %v3598_v31 = vld [vmem:[%s4867_s3 + $0x3f0] sm:$0xff]  ;;  %v3589_v34 = vld [vmem:[%s4867_s3 + $0x3a8] sm:$0xff] }
  0xc8   :  { %v915_v59 = vadd.f32 %v914_v56, %v161_v47  ;;  %v1056_v4 = vpack.c.bf16 %v1040_v62, %v1040_v62  ;;  %2155 = vmatmul.bf16.vlgmr.msrb.gmra.mxu0 %v1055_v3  ;;  %v166_v47 = vperm.slane %v4770_v28, 3  ;;  %v3586_v3 = vld [vmem:[%s4867_s3 + $0x390] sm:$0xff] }
  0xc9   :  { %2200 = vmatpush.bf16.msra.mxu0 %v3542_v33  ;;  %2226 = vmatpush.bf16.msra.mxu2 %v3558_v36  ;;  %v890_v10 = vpop.f32.mrf.mxu0  ;;  %v3581_v33 = vld [vmem:[%s4867_s3 + $0x368] sm:$0xff]  ;;  %v3572_v36 = vld [vmem:[%s4867_s3 + $0x320] sm:$0xff] }
  0xca   :  { %v927_v61 = vpop.f32.mrf.mxu3  ;;  %v1041_v2 = vmax.f32 %v915_v59, 0.0  ;;  %2168 = vmatmul.bf16.vlgmr.msrb.gmra.mxu1 %v1056_v4  ;;  %v3594_v4 = vld [vmem:[%s4867_s3 + $0x3d0] sm:$0xff]  ;;  %v3585_v10 = vld [vmem:[%s4867_s3 + $0x388] sm:$0xff] }
  0xcb   :  { %2213 = vmatpush.bf16.msra.mxu1 %v3550_v35  ;;  %2239 = vmatpush.bf16.msra.mxu3 %v3566_v38  ;;  %v928_v51 = vadd.f32 %v927_v61, %v162_v52  ;;  %v903_v11 = vpop.f32.mrf.mxu1  ;;  %v164_v35 = vperm.slane %v4770_v28, 1  ;;  %v3570_v61 = vld [vmem:[%s4867_s3 + $0x310] sm:$0xff] }
  0xcc   :  { %v1057_v7 = vpack.c.bf16 %v1041_v2, %v1041_v2  ;;  %v3593_v11 = vld [vmem:[%s4867_s3 + $0x3c8] sm:$0xff] }
  0xcd   :  { %2201 = vmatpush.bf16.msra.mxu0 %v3541_v37  ;;  %2227 = vmatpush.bf16.msra.mxu2 %v3557_v40  ;;  %v1042_v5 = vmax.f32 %v928_v51, 0.0  ;;  %v3597_v37 = vld [vmem:[%s4867_s3 + $0x3e8] sm:$0xff]  ;;  %v3580_v40 = vld [vmem:[%s4867_s3 + $0x360] sm:$0xff] }
  0xce   :  { %2181 = vmatmul.bf16.vlgmr.msrb.gmra.mxu2 %v1057_v7 }
  0xcf   :  { %2214 = vmatpush.bf16.msra.mxu1 %v3549_v39  ;;  %2240 = vmatpush.bf16.msra.mxu3 %v3565_v42  ;;  %v1058_v9 = vpack.c.bf16 %v1042_v5, %v1042_v5  ;;  %v916_v14 = vpop.f32.mrf.mxu2  ;;  %v3588_v42 = vld [vmem:[%s4867_s3 + $0x3a0] sm:$0xff] }
  0xd0   :  { %v3584_v14 = vld [vmem:[%s4867_s3 + $0x380] sm:$0xff] }
  0xd1   :  { %2202 = vmatpush.bf16.msra.mxu0 %v3540_v41  ;;  %2228 = vmatpush.bf16.msra.mxu2 %v3556_v46  ;;  %v3596_v46 = vld [vmem:[%s4867_s3 + $0x3e0] sm:$0xff] }
  0xd2   :  { %2194 = vmatmul.bf16.vlgmr.msrb.gmra.mxu3 %v1058_v9  ;;  %v929_v16 = vpop.f32.mrf.mxu3 }
  0xd3   :  { %2215 = vmatpush.bf16.msra.mxu1 %v3548_v45  ;;  %2241 = vmatpush.bf16.msra.mxu3 %v3564_v49  ;;  %v165_v45 = vperm.slane %v4770_v28, 2  ;;  %v167_v16 = vperm.slane %v4770_v28, 4 }
  0xd5   :  { %2203 = vmatpush.bf16.msra.mxu0 %v3539_v48  ;;  %2229 = vmatpush.bf16.msra.mxu2 %v3555_v58  ;;  %v3571_v48 = vld [vmem:[%s4867_s3 + $0x318] sm:$0xff] }
  0xd6   :  { %v3595_v58 = vld [vmem:[%s4867_s3 + $0x3d8] sm:$0xff] }
  0xd7   :  { %2216 = vmatpush.bf16.msra.mxu1 %v3547_v57  ;;  %2242 = vmatpush.bf16.msra.mxu3 %v3563_v1  ;;  %v3578_v1 = vld [vmem:[%s4867_s3 + $0x350] sm:$0xff] }
  0xd9   :  { %2204 = vmatpush.bf16.msra.mxu0 %v3538_v0  ;;  %2230 = vmatpush.bf16.msra.mxu2 %v3554_v8  ;;  %v3577_v8 = vld [vmem:[%s4867_s3 + $0x348] sm:$0xff] }
  0xdb   :  { %2217 = vmatpush.bf16.msra.mxu1 %v3546_v6  ;;  %2243 = vmatpush.bf16.msra.mxu3 %v3562_v13  ;;  %v3569_v6 = vld [vmem:[%s4867_s3 + $0x308] sm:$0xff]  ;;  %v3576_v13 = vld [vmem:[%s4867_s3 + $0x340] sm:$0xff] }
  0xdd   :  { %2205 = vmatpush.bf16.msra.mxu0 %v3537_v12  ;;  %2231 = vmatpush.bf16.msra.mxu2 %v3553_v63  ;;  %v3568_v12 = vld [vmem:[%s4867_s3 + $0x300] sm:$0xff] }
  0xdf   :  { %2218 = vmatpush.bf16.msra.mxu1 %v3545_v15  ;;  %2244 = vmatpush.bf16.msra.mxu3 %v3561_v18  ;;  %v3592_v15 = vld [vmem:[%s4867_s3 + $0x3c0] sm:$0xff] }
  0xe1   :  { %2206 = vmatpush.bf16.msra.mxu0 %v3536_v17  ;;  %2232 = vmatpush.bf16.msra.mxu2 %v3552_v22  ;;  %v940_v38 = vpop.f32.mrf.mxu0  ;;  %v168_v17 = vperm.slane %v4770_v28, 5  ;;  %v169_v22 = vperm.slane %v4770_v28, 6 }
  0xe2   :  { %v941_v39 = vadd.f32 %v940_v38, %v163_v32 }
  0xe3   :  { %2219 = vmatpush.bf16.msra.mxu1 %v3544_v20  ;;  %2245 = vmatpush.bf16.msra.mxu3 %v3560_v23  ;;  %v953_v41 = vpop.f32.mrf.mxu1  ;;  %v170_v23 = vperm.slane %v4770_v28, 7  ;;  %v3601_v28 = vld [vmem:[%s4868_s4] ss:$0 sm:$0xff]  ;;  %s3628_s4 = smov [#allocation2]  }
  0xe4   :  { %v1043_v43 = vmax.f32 %v941_v39, 0.0  ;;  %v954_v44 = vadd.f32 %v953_v41, %v164_v35  ;;  %s2309_s8 = sshll.u32 %s3628_s4, 4  ;;  %s2310_s8 = int_to_ptr.vmem [resolvable:$true] %s2309_s8 }
  0xe5   :  { %2251 = vmatpush.bf16.msrb.mxu0 %v3575_v19  ;;  %2277 = vmatpush.bf16.msrb.mxu2 %v3591_v24 }
  0xe6   :  { %v1059_v49 = vpack.c.bf16 %v1043_v43, %v1043_v43  ;;  %v1044_v50 = vmax.f32 %v954_v44, 0.0 }
  0xe7   :  { %2264 = vmatpush.bf16.msrb.mxu1 %v3583_v21  ;;  %2290 = vmatpush.bf16.msrb.mxu3 %v3599_v26  ;;  %v966_v52 = vpop.f32.mrf.mxu2 }
  0xe8   :  { %v1060_v55 = vpack.c.bf16 %v1044_v50, %v1044_v50  ;;  %v967_v56 = vadd.f32 %v966_v52, %v165_v45  ;;  %2207 = vmatmul.bf16.vlgmr.msra.gmra.mxu0 %v1059_v49 }
  0xe9   :  { %2252 = vmatpush.bf16.msrb.mxu0 %v3574_v25  ;;  %2278 = vmatpush.bf16.msrb.mxu2 %v3590_v29  ;;  %v942_v60 = vpop.f32.mrf.mxu0 }
  0xea   :  { %v979_v57 = vpop.f32.mrf.mxu3  ;;  %v1045_v62 = vmax.f32 %v967_v56, 0.0  ;;  %2220 = vmatmul.bf16.vlgmr.msra.gmra.mxu1 %v1060_v55 }
  0xeb   :  { %2265 = vmatpush.bf16.msrb.mxu1 %v3582_v27  ;;  %2291 = vmatpush.bf16.msrb.mxu3 %v3598_v31  ;;  %v980_v59 = vadd.f32 %v979_v57, %v166_v47  ;;  %v955_v0 = vpop.f32.mrf.mxu1 }
  0xec   :  { %v1061_v2 = vpack.c.bf16 %v1045_v62, %v1045_v62 }
  0xed   :  { %2253 = vmatpush.bf16.msrb.mxu0 %v3573_v30  ;;  %2279 = vmatpush.bf16.msrb.mxu2 %v3589_v34  ;;  %v1046_v51 = vmax.f32 %v980_v59, 0.0 }
  0xee   :  { %2233 = vmatmul.bf16.vlgmr.msra.gmra.mxu2 %v1061_v2 }
  0xef   :  { %2266 = vmatpush.bf16.msrb.mxu1 %v3581_v33  ;;  %2292 = vmatpush.bf16.msrb.mxu3 %v3597_v37  ;;  %v1062_v5 = vpack.c.bf16 %v1046_v51, %v1046_v51  ;;  %v968_v7 = vpop.f32.mrf.mxu2 }
  0xf1   :  { %2254 = vmatpush.bf16.msrb.mxu0 %v3572_v36  ;;  %2280 = vmatpush.bf16.msrb.mxu2 %v3588_v42 }
  0xf2   :  { %2246 = vmatmul.bf16.vlgmr.msra.gmra.mxu3 %v1062_v5  ;;  %v981_v9 = vpop.f32.mrf.mxu3 }
  0xf3   :  { %2267 = vmatpush.bf16.msrb.mxu1 %v3580_v40  ;;  %2293 = vmatpush.bf16.msrb.mxu3 %v3596_v46 }
  0xf5   :  { %2255 = vmatpush.bf16.msrb.mxu0 %v3571_v48  ;;  %2281 = vmatpush.bf16.msrb.mxu2 %v3587_v54 }
  0xf7   :  { %2268 = vmatpush.bf16.msrb.mxu1 %v3579_v53  ;;  %2294 = vmatpush.bf16.msrb.mxu3 %v3595_v58 }
  0xf9   :  { %2256 = vmatpush.bf16.msrb.mxu0 %v3570_v61  ;;  %2282 = vmatpush.bf16.msrb.mxu2 %v3586_v3 }
  0xfb   :  { %2269 = vmatpush.bf16.msrb.mxu1 %v3578_v1  ;;  %2295 = vmatpush.bf16.msrb.mxu3 %v3594_v4 }
  0xfd   :  { %2257 = vmatpush.bf16.msrb.mxu0 %v3569_v6  ;;  %2283 = vmatpush.bf16.msrb.mxu2 %v3585_v10 }
  0xff   :  { %2270 = vmatpush.bf16.msrb.mxu1 %v3577_v8  ;;  %2296 = vmatpush.bf16.msrb.mxu3 %v3593_v11 }
 0x101   :  { %2258 = vmatpush.bf16.msrb.mxu0 %v3568_v12  ;;  %2284 = vmatpush.bf16.msrb.mxu2 %v3584_v14  ;;  %v992_v63 = vpop.f32.mrf.mxu0 }
 0x102   :  { %v993_v18 = vadd.f32 %v992_v63, %v167_v16 }
 0x103   :  { %2271 = vmatpush.bf16.msrb.mxu1 %v3576_v13  ;;  %2297 = vmatpush.bf16.msrb.mxu3 %v3592_v15  ;;  %v1005_v20 = vpop.f32.mrf.mxu1 }
 0x104   :  { %v1047_v19 = vmax.f32 %v993_v18, 0.0  ;;  %v1006_v21 = vadd.f32 %v1005_v20, %v168_v17 }
 0x106   :  { %v1063_v24 = vpack.c.bf16 %v1047_v19, %v1047_v19  ;;  %v1048_v25 = vmax.f32 %v1006_v21, 0.0 }
 0x107   :  { %v1018_v26 = vpop.f32.mrf.mxu2 }
 0x108   :  { %2259 = vmatmul.bf16.vlgmr.msrb.gmra.mxu0 %v1063_v24  ;;  %v1064_v29 = vpack.c.bf16 %v1048_v25, %v1048_v25  ;;  %v1019_v30 = vadd.f32 %v1018_v26, %v169_v22 }
 0x109   :  { %v1031_v27 = vpop.f32.mrf.mxu3  ;;  %v994_v32 = vpop.f32.mrf.mxu0 }
 0x10a   :  { %v1032_v31 = vadd.f32 %v1031_v27, %v170_v23  ;;  %v1049_v33 = vmax.f32 %v1019_v30, 0.0  ;;  %2272 = vmatmul.bf16.vlgmr.msrb.gmra.mxu1 %v1064_v29 }
 0x10b   :  { %v1007_v35 = vpop.f32.mrf.mxu1 }
 0x10c   :  { %v1050_v34 = vmax.f32 %v1032_v31, 0.0  ;;  %v1065_v36 = vpack.c.bf16 %v1049_v33, %v1049_v33 }
 0x10e   :  { %v1066_v37 = vpack.c.bf16 %v1050_v34, %v1050_v34  ;;  %2285 = vmatmul.bf16.vlgmr.msrb.gmra.mxu2 %v1065_v36 }
 0x10f   :  { %v1020_v38 = vpop.f32.mrf.mxu2 }
 0x110   :  { %2298 = vmatmul.bf16.vlgmr.msrb.gmra.mxu3 %v1066_v37 }
 0x111   :  { %v1033_v39 = vpop.f32.mrf.mxu3 }
 0x125   :  { %v2104_v40 = vpop.f32.mrf.mxu0 }
 0x126   :  { %v2105_v41 = vadd.f32 %v3601_v28, %v2104_v40 }
 0x127   :  { %v2117_v42 = vpop.f32.mrf.mxu1 }
 0x128   :  { %v2118_v43 = vadd.f32 %v2117_v42, %v2105_v41 }
 0x12d   :  { %v2106_v44 = vpop.f32.mrf.mxu0 }
 0x12f   :  { %v2119_v45 = vpop.f32.mrf.mxu1 }
 0x131   :  { %v2130_v46 = vpop.f32.mrf.mxu2 }
 0x132   :  { %v2131_v61 = vadd.f32 %v2130_v46, %v2118_v43 }
 0x135   :  { %v2143_v47 = vpop.f32.mrf.mxu3 }
 0x136   :  { %v2144_v62 = vadd.f32 %v2143_v47, %v2131_v61 }
 0x139   :  { %v2132_v48 = vpop.f32.mrf.mxu2 }
 0x13d   :  { %v2145_v49 = vpop.f32.mrf.mxu3 }
 0x145   :  { %v2156_v50 = vpop.f32.mrf.mxu0 }
 0x146   :  { %v2157_v1 = vadd.f32 %v2156_v50, %v2144_v62 }
 0x147   :  { %v2169_v52 = vpop.f32.mrf.mxu1 }
 0x148   :  { %v2170_v4 = vadd.f32 %v2169_v52, %v2157_v1 }
 0x14d   :  { %v2158_v54 = vpop.f32.mrf.mxu0 }
 0x14f   :  { %v2171_v56 = vpop.f32.mrf.mxu1 }
 0x151   :  { %v2182_v53 = vpop.f32.mrf.mxu2 }
 0x152   :  { %v2183_v5 = vadd.f32 %v2182_v53, %v2170_v4 }
 0x155   :  { %v2195_v55 = vpop.f32.mrf.mxu3 }
 0x156   :  { %v2196_v8 = vadd.f32 %v2195_v55, %v2183_v5 }
 0x159   :  { %v2184_v57 = vpop.f32.mrf.mxu2 }
 0x15d   :  { %v2197_v58 = vpop.f32.mrf.mxu3 }
 0x165   :  { %v2208_v59 = vpop.f32.mrf.mxu0 }
 0x166   :  { %v2209_v9 = vadd.f32 %v2208_v59, %v2196_v8 }
 0x167   :  { %v2221_v60 = vpop.f32.mrf.mxu1 }
 0x168   :  { %v2222_v10 = vadd.f32 %v2221_v60, %v2209_v9 }
 0x16d   :  { %v2210_v51 = vpop.f32.mrf.mxu0 }
 0x16f   :  { %v2223_v0 = vpop.f32.mrf.mxu1 }
 0x171   :  { %v2234_v2 = vpop.f32.mrf.mxu2 }
 0x172   :  { %v2235_v12 = vadd.f32 %v2234_v2, %v2222_v10 }
 0x175   :  { %v2247_v3 = vpop.f32.mrf.mxu3 }
 0x176   :  { %v2248_v14 = vadd.f32 %v2247_v3, %v2235_v12 }
 0x179   :  { %v2236_v6 = vpop.f32.mrf.mxu2 }
 0x17d   :  { %v2249_v7 = vpop.f32.mrf.mxu3 }
 0x185   :  { %v2260_v11 = vpop.f32.mrf.mxu0 }
 0x186   :  { %v2261_v15 = vadd.f32 %v2260_v11, %v2248_v14 }
 0x187   :  { %v2273_v13 = vpop.f32.mrf.mxu1 }
 0x188   :  { %v2274_v17 = vadd.f32 %v2273_v13, %v2261_v15 }
 0x18d   :  { %v2262_v16 = vpop.f32.mrf.mxu0 }
 0x18f   :  { %v2275_v63 = vpop.f32.mrf.mxu1 }
 0x191   :  { %v2286_v18 = vpop.f32.mrf.mxu2 }
 0x192   :  { %v2287_v20 = vadd.f32 %v2286_v18, %v2274_v17 }
 0x193   :  { %v2299_v19 = vpop.f32.mrf.mxu3 }
 0x194   :  { %v2300_v21 = vadd.f32 %v2299_v19, %v2287_v20 }
 0x196   :  { %2303 = vst [vmem:[#allocation2] sm:$0x3] %v2300_v21 }
 0x197   :  { %2314 = dma.vmem_to_hbm [thread:$0]  %s2310_s8, 32, %s2312_s11, [#allocation3]  }
 0x199   :  { %v2288_v22 = vpop.f32.mrf.mxu2 }
 0x19b   :  { %v2301_v23 = vpop.f32.mrf.mxu3 }
 0x19c   :  { %3626 = dma.done.wait [#allocation3], 32  }
 0x19d   :  { %3627 = vsyncadd [#allocation3], 4294967264 }
 0x19e   :  { %2319 = vsyncpa [#allocation3], 1 }

</bundles_post_ra>
